<compile_context>
chip_gen: v6e
topology: v6e:2x2x1
jax: 0.10.0
libtpu: 0.0.40
codegen_flags: <defaults>
</compile_context>

<pallas_src>
import functools

import jax
import jax.numpy as jnp
from jax import lax
from jax.experimental import pallas as pl
from jax.experimental.pallas import tpu as pltpu


def ccm_kernel(x_ref, w1_ref, b1_ref, w2_ref, b2_ref, o_ref, *, tile_h, wp):
    # x_ref : (1, FLAT_IN, Cin)    zero-padded image, padded (H+2, W+2) grid flattened
    #                              row-major (spatial on sublanes, channels on lanes)
    # w1_ref: (9*Cin, hidden_p)    3x3 conv weights, tap-major ((dy,dx) outer, cin inner)
    # b1_ref: (1, hidden_p)
    # w2_ref: (hidden_p, out_dim)  1x1 conv weights
    # b2_ref: (1, out_dim)
    # o_ref : (1, tile_h*wp, out_dim)  output row strip on the padded-width grid
    #                                  (2 garbage columns/row are cropped by the wrapper)
    cin = x_ref.shape[-1]
    s = o_ref.shape[1]                       # = tile_h * wp
    hidden_p = w1_ref.shape[-1]

    base = pl.program_id(1) * (tile_h * wp)  # first padded row of this strip (flat index)

    # 3x3 conv == 9 shifted-view matmuls accumulated in f32.  Tap (dy, dx) is a flat
    # offset of dy*wp + dx on the padded grid, so every tap is a plain dynamic sublane
    # slice of the resident image -- no im2col materialization, no 9x HBM blowup.
    acc = jnp.zeros((s, hidden_p), dtype=jnp.float32)
    for tap in range(9):
        dy, dx = tap // 3, tap % 3
        patch = x_ref[0, pl.ds(base + dy * wp + dx, s), :]           # (s, Cin)
        w_tap = w1_ref[tap * cin:(tap + 1) * cin, :]                 # (Cin, hidden_p)
        acc = acc + jnp.dot(patch, w_tap, preferred_element_type=jnp.float32)

    h = jnp.maximum(acc + b1_ref[...], 0.0)                          # bias + ReLU
    out = jnp.dot(h, w2_ref[...], preferred_element_type=jnp.float32) + b2_ref[...]
    o_ref[0] = out.astype(o_ref.dtype)


def _pick_tile_h(H, W):
    """Row-strip height: divides H, keeps the strip sublane-aligned
    ((tile_h*(W+2)) % 8 == 0) and yields > 1 tile; falls back to the full image."""
    wp = W + 2
    cands = [th for th in range(1, H) if H % th == 0 and (th * wp) % 8 == 0]
    if not cands:
        return H
    for th in cands:                 # prefer strips of >= 1024 spatial positions
        if th * wp >= 1024:
            return th
    return cands[-1]


def ccm_pallas(x_nchw, w1, b1, w2, b2):
    """x_nchw: (N, Cin, H, W) f32.  w1: (3,3,Cin,hidden) HWIO, b1: (hidden,),
    w2: (hidden, out_dim), b2: (out_dim,).  Returns (N, out_dim, H, W)."""
    N, Cin, H, W = x_nchw.shape
    hidden = w1.shape[-1]
    out_dim = w2.shape[-1]
    wp = W + 2
    tile_h = _pick_tile_h(H, W)
    n_tiles = H // tile_h
    s = tile_h * wp                              # spatial positions per output strip
    hidden_p = max(8, -(-hidden // 8) * 8)       # pad hidden to a sublane multiple

    # Layout glue (cheap, 1x traffic): NCHW -> padded NHWC, spatial flattened row-major
    # over the padded (H+2, W+2) grid so a conv tap shift becomes a flat offset.
    xp = jnp.pad(jnp.transpose(x_nchw, (0, 2, 3, 1)), ((0, 0), (1, 1), (1, 1), (0, 0)))
    flat_rows = (H + 2) * wp
    flat_in = -(-(flat_rows + 2) // 8) * 8       # +2 keeps the deepest tap slice in-bounds
    x_flat = jnp.pad(xp.reshape(N, flat_rows, Cin),
                     ((0, 0), (0, flat_in - flat_rows), (0, 0)))

    # Weights in tap-major contraction layout, hidden zero-padded to hidden_p.
    w1_k = jnp.pad(w1.reshape(9 * Cin, hidden), ((0, 0), (0, hidden_p - hidden)))
    b1_k = jnp.pad(b1.reshape(1, hidden), ((0, 0), (0, hidden_p - hidden)))
    w2_k = jnp.pad(w2, ((0, hidden_p - hidden), (0, 0)))
    b2_k = b2.reshape(1, out_dim)

    flops = 2 * N * H * W * hidden * (9 * Cin + out_dim)
    bytes_accessed = 4 * (x_flat.size + w1_k.size + b1_k.size + w2_k.size + b2_k.size
                          + N * H * wp * out_dim)

    out_flat = pl.pallas_call(
        functools.partial(ccm_kernel, tile_h=tile_h, wp=wp),
        out_shape=jax.ShapeDtypeStruct((N, H * wp, out_dim), x_nchw.dtype),
        grid_spec=pltpu.PrefetchScalarGridSpec(
            num_scalar_prefetch=0,
            grid=(N, n_tiles),
            in_specs=[
                # Padded image resident per batch (re-fetched only when n changes);
                # weights / biases are tiny resident blocks.
                pl.BlockSpec((1, flat_in, Cin), lambda n, t: (n, 0, 0)),
                pl.BlockSpec((9 * Cin, hidden_p), lambda n, t: (0, 0)),
                pl.BlockSpec((1, hidden_p), lambda n, t: (0, 0)),
                pl.BlockSpec((hidden_p, out_dim), lambda n, t: (0, 0)),
                pl.BlockSpec((1, out_dim), lambda n, t: (0, 0)),
            ],
            out_specs=pl.BlockSpec((1, s, out_dim), lambda n, t: (n, t, 0)),
        ),
        compiler_params=pltpu.CompilerParams(
            dimension_semantics=("parallel", "parallel"),
            vmem_limit_bytes=32 * 1024 * 1024),
        cost_estimate=pl.CostEstimate(flops=flops, transcendentals=0,
                                      bytes_accessed=bytes_accessed),
    )(x_flat, w1_k, b1_k, w2_k, b2_k)

    # Crop the 2 padded-width garbage columns and return to NCHW (wrapper-side glue).
    out = out_flat.reshape(N, H, wp, out_dim)[:, :, :W, :]
    return jnp.transpose(out, (0, 3, 1, 2))


def ccm_reference(x_nchw, w1, b1, w2, b2):
    """Plain-JAX reference (NHWC convs) for correctness checking."""
    x = jnp.transpose(x_nchw, (0, 2, 3, 1))
    y = lax.conv_general_dilated(
        x, w1, window_strides=(1, 1), padding="SAME",
        dimension_numbers=("NHWC", "HWIO", "NHWC")) + b1
    y = jnp.maximum(y, 0.0)
    z = lax.conv_general_dilated(
        y, w2.reshape(1, 1, *w2.shape), window_strides=(1, 1), padding="VALID",
        dimension_numbers=("NHWC", "HWIO", "NHWC")) + b2
    return jnp.transpose(z, (0, 3, 1, 2))


if __name__ == "__main__":
    # Small shapes consistent with CCM(dim=8, out_dim=16, growth_rate=0.5).
    N, dim, H, W = 2, 8, 16, 16
    out_dim = 16
    growth_rate = 0.5
    hidden = int(dim * growth_rate)  # = 4

    key = jax.random.PRNGKey(0)
    kx, kw1, kb1, kw2, kb2 = jax.random.split(key, 5)

    x = jax.random.normal(kx, (N, dim, H, W), dtype=jnp.float32)
    # Deterministic synthetic parameters (HWIO layout for conv weights).
    w1 = 0.1 * jax.random.normal(kw1, (3, 3, dim, hidden), dtype=jnp.float32)
    b1 = 0.1 * jax.random.normal(kb1, (hidden,), dtype=jnp.float32)
    w2 = 0.1 * jax.random.normal(kw2, (hidden, out_dim), dtype=jnp.float32)
    b2 = 0.1 * jax.random.normal(kb2, (out_dim,), dtype=jnp.float32)

    out = jax.block_until_ready(ccm_pallas(x, w1, b1, w2, b2))
    ref = jax.block_until_ready(ccm_reference(x, w1, b1, w2, b2))

    assert out.shape == (N, out_dim, H, W), out.shape
    assert jnp.allclose(out, ref, atol=1e-4, rtol=1e-4), "mismatch vs reference"
    print("KERNEL_OK")
</pallas_src>

<mosaic_0001>
module attributes {stable_mosaic.version = 11 : i64} {
  func.func @ccm_kernel(%arg0: i32, %arg1: i32, %arg2: memref<1x328x8xf32, #tpu.memory_space<vmem>>, %arg3: memref<72x8xf32, #tpu.memory_space<vmem>>, %arg4: memref<1x8xf32, #tpu.memory_space<vmem>>, %arg5: memref<8x16xf32, #tpu.memory_space<vmem>>, %arg6: memref<1x16xf32, #tpu.memory_space<vmem>>, %arg7: memref<1x144x16xf32, #tpu.memory_space<vmem>>) attributes {dimension_semantics = [#tpu.dimension_semantics<parallel>, #tpu.dimension_semantics<parallel>], iteration_bounds = array<i64: 2, 2>, scalar_prefetch = 0 : i64, scratch_operands = 0 : i64, tpu.core_type = #tpu.core_type<tc>, window_params = [{transform_indices = @transform_0, window_bounds = array<i64: 1, 328, 8>}, {pipeline_mode = #tpu.pipeline_mode<synchronous>, transform_indices = @transform_1, window_bounds = array<i64: 72, 8>}, {pipeline_mode = #tpu.pipeline_mode<synchronous>, transform_indices = @transform_2, window_bounds = array<i64: 1, 8>}, {pipeline_mode = #tpu.pipeline_mode<synchronous>, transform_indices = @transform_3, window_bounds = array<i64: 8, 16>}, {pipeline_mode = #tpu.pipeline_mode<synchronous>, transform_indices = @transform_4, window_bounds = array<i64: 1, 16>}, {transform_indices = @transform_5, window_bounds = array<i64: 1, 144, 16>}]} {
    %c144_i32 = arith.constant 144 : i32
    %0 = arith.muli %arg1, %c144_i32 : i32
    %cst = arith.constant 0.000000e+00 : f32
    %1 = vector.broadcast %cst : f32 to vector<144x8xf32>
    %c0_i32 = arith.constant 0 : i32
    %2 = arith.addi %0, %c0_i32 : i32
    %c0_i32_0 = arith.constant 0 : i32
    %3 = arith.addi %2, %c0_i32_0 : i32
    %c0 = arith.constant 0 : index
    %4 = arith.index_cast %3 : i32 to index
    %c0_1 = arith.constant 0 : index
    %5 = vector.load %arg2[%c0, %4, %c0_1] : memref<1x328x8xf32, #tpu.memory_space<vmem>>, vector<1x144x8xf32>
    %6 = vector.shape_cast %5 : vector<1x144x8xf32> to vector<144x8xf32>
    %c0_2 = arith.constant 0 : index
    %c0_3 = arith.constant 0 : index
    %7 = vector.load %arg3[%c0_2, %c0_3] : memref<72x8xf32, #tpu.memory_space<vmem>>, vector<8x8xf32>
    %cst_4 = arith.constant dense<0.000000e+00> : vector<144x8xf32>
    %8 = tpu.matmul %6, %7, %cst_4 {dimension_numbers = #tpu.dot_dimension_numbers<[1], [0], [0], [1], [0, 0, 1, 1], [], []>} : vector<144x8xf32>, vector<8x8xf32>, vector<144x8xf32> -> vector<144x8xf32>
    %9 = arith.addf %1, %8 : vector<144x8xf32>
    %c0_i32_5 = arith.constant 0 : i32
    %10 = arith.addi %0, %c0_i32_5 : i32
    %c1_i32 = arith.constant 1 : i32
    %11 = arith.addi %10, %c1_i32 : i32
    %c0_6 = arith.constant 0 : index
    %12 = arith.index_cast %11 : i32 to index
    %c0_7 = arith.constant 0 : index
    %13 = vector.load %arg2[%c0_6, %12, %c0_7] : memref<1x328x8xf32, #tpu.memory_space<vmem>>, vector<1x144x8xf32>
    %14 = vector.shape_cast %13 : vector<1x144x8xf32> to vector<144x8xf32>
    %c8 = arith.constant 8 : index
    %c0_8 = arith.constant 0 : index
    %15 = vector.load %arg3[%c8, %c0_8] : memref<72x8xf32, #tpu.memory_space<vmem>>, vector<8x8xf32>
    %cst_9 = arith.constant dense<0.000000e+00> : vector<144x8xf32>
    %16 = tpu.matmul %14, %15, %cst_9 {dimension_numbers = #tpu.dot_dimension_numbers<[1], [0], [0], [1], [0, 0, 1, 1], [], []>} : vector<144x8xf32>, vector<8x8xf32>, vector<144x8xf32> -> vector<144x8xf32>
    %17 = arith.addf %9, %16 : vector<144x8xf32>
    %c0_i32_10 = arith.constant 0 : i32
    %18 = arith.addi %0, %c0_i32_10 : i32
    %c2_i32 = arith.constant 2 : i32
    %19 = arith.addi %18, %c2_i32 : i32
    %c0_11 = arith.constant 0 : index
    %20 = arith.index_cast %19 : i32 to index
    %c0_12 = arith.constant 0 : index
    %21 = vector.load %arg2[%c0_11, %20, %c0_12] : memref<1x328x8xf32, #tpu.memory_space<vmem>>, vector<1x144x8xf32>
    %22 = vector.shape_cast %21 : vector<1x144x8xf32> to vector<144x8xf32>
    %c16 = arith.constant 16 : index
    %c0_13 = arith.constant 0 : index
    %23 = vector.load %arg3[%c16, %c0_13] : memref<72x8xf32, #tpu.memory_space<vmem>>, vector<8x8xf32>
    %cst_14 = arith.constant dense<0.000000e+00> : vector<144x8xf32>
    %24 = tpu.matmul %22, %23, %cst_14 {dimension_numbers = #tpu.dot_dimension_numbers<[1], [0], [0], [1], [0, 0, 1, 1], [], []>} : vector<144x8xf32>, vector<8x8xf32>, vector<144x8xf32> -> vector<144x8xf32>
    %25 = arith.addf %17, %24 : vector<144x8xf32>
    %c18_i32 = arith.constant 18 : i32
    %26 = arith.addi %0, %c18_i32 : i32
    %c0_i32_15 = arith.constant 0 : i32
    %27 = arith.addi %26, %c0_i32_15 : i32
    %c0_16 = arith.constant 0 : index
    %28 = arith.index_cast %27 : i32 to index
    %c0_17 = arith.constant 0 : index
    %29 = vector.load %arg2[%c0_16, %28, %c0_17] : memref<1x328x8xf32, #tpu.memory_space<vmem>>, vector<1x144x8xf32>
    %30 = vector.shape_cast %29 : vector<1x144x8xf32> to vector<144x8xf32>
    %c24 = arith.constant 24 : index
    %c0_18 = arith.constant 0 : index
    %31 = vector.load %arg3[%c24, %c0_18] : memref<72x8xf32, #tpu.memory_space<vmem>>, vector<8x8xf32>
    %cst_19 = arith.constant dense<0.000000e+00> : vector<144x8xf32>
    %32 = tpu.matmul %30, %31, %cst_19 {dimension_numbers = #tpu.dot_dimension_numbers<[1], [0], [0], [1], [0, 0, 1, 1], [], []>} : vector<144x8xf32>, vector<8x8xf32>, vector<144x8xf32> -> vector<144x8xf32>
    %33 = arith.addf %25, %32 : vector<144x8xf32>
    %c18_i32_20 = arith.constant 18 : i32
    %34 = arith.addi %0, %c18_i32_20 : i32
    %c1_i32_21 = arith.constant 1 : i32
    %35 = arith.addi %34, %c1_i32_21 : i32
    %c0_22 = arith.constant 0 : index
    %36 = arith.index_cast %35 : i32 to index
    %c0_23 = arith.constant 0 : index
    %37 = vector.load %arg2[%c0_22, %36, %c0_23] : memref<1x328x8xf32, #tpu.memory_space<vmem>>, vector<1x144x8xf32>
    %38 = vector.shape_cast %37 : vector<1x144x8xf32> to vector<144x8xf32>
    %c32 = arith.constant 32 : index
    %c0_24 = arith.constant 0 : index
    %39 = vector.load %arg3[%c32, %c0_24] : memref<72x8xf32, #tpu.memory_space<vmem>>, vector<8x8xf32>
    %cst_25 = arith.constant dense<0.000000e+00> : vector<144x8xf32>
    %40 = tpu.matmul %38, %39, %cst_25 {dimension_numbers = #tpu.dot_dimension_numbers<[1], [0], [0], [1], [0, 0, 1, 1], [], []>} : vector<144x8xf32>, vector<8x8xf32>, vector<144x8xf32> -> vector<144x8xf32>
    %41 = arith.addf %33, %40 : vector<144x8xf32>
    %c18_i32_26 = arith.constant 18 : i32
    %42 = arith.addi %0, %c18_i32_26 : i32
    %c2_i32_27 = arith.constant 2 : i32
    %43 = arith.addi %42, %c2_i32_27 : i32
    %c0_28 = arith.constant 0 : index
    %44 = arith.index_cast %43 : i32 to index
    %c0_29 = arith.constant 0 : index
    %45 = vector.load %arg2[%c0_28, %44, %c0_29] : memref<1x328x8xf32, #tpu.memory_space<vmem>>, vector<1x144x8xf32>
    %46 = vector.shape_cast %45 : vector<1x144x8xf32> to vector<144x8xf32>
    %c40 = arith.constant 40 : index
    %c0_30 = arith.constant 0 : index
    %47 = vector.load %arg3[%c40, %c0_30] : memref<72x8xf32, #tpu.memory_space<vmem>>, vector<8x8xf32>
    %cst_31 = arith.constant dense<0.000000e+00> : vector<144x8xf32>
    %48 = tpu.matmul %46, %47, %cst_31 {dimension_numbers = #tpu.dot_dimension_numbers<[1], [0], [0], [1], [0, 0, 1, 1], [], []>} : vector<144x8xf32>, vector<8x8xf32>, vector<144x8xf32> -> vector<144x8xf32>
    %49 = arith.addf %41, %48 : vector<144x8xf32>
    %c36_i32 = arith.constant 36 : i32
    %50 = arith.addi %0, %c36_i32 : i32
    %c0_i32_32 = arith.constant 0 : i32
    %51 = arith.addi %50, %c0_i32_32 : i32
    %c0_33 = arith.constant 0 : index
    %52 = arith.index_cast %51 : i32 to index
    %c0_34 = arith.constant 0 : index
    %53 = vector.load %arg2[%c0_33, %52, %c0_34] : memref<1x328x8xf32, #tpu.memory_space<vmem>>, vector<1x144x8xf32>
    %54 = vector.shape_cast %53 : vector<1x144x8xf32> to vector<144x8xf32>
    %c48 = arith.constant 48 : index
    %c0_35 = arith.constant 0 : index
    %55 = vector.load %arg3[%c48, %c0_35] : memref<72x8xf32, #tpu.memory_space<vmem>>, vector<8x8xf32>
    %cst_36 = arith.constant dense<0.000000e+00> : vector<144x8xf32>
    %56 = tpu.matmul %54, %55, %cst_36 {dimension_numbers = #tpu.dot_dimension_numbers<[1], [0], [0], [1], [0, 0, 1, 1], [], []>} : vector<144x8xf32>, vector<8x8xf32>, vector<144x8xf32> -> vector<144x8xf32>
    %57 = arith.addf %49, %56 : vector<144x8xf32>
    %c36_i32_37 = arith.constant 36 : i32
    %58 = arith.addi %0, %c36_i32_37 : i32
    %c1_i32_38 = arith.constant 1 : i32
    %59 = arith.addi %58, %c1_i32_38 : i32
    %c0_39 = arith.constant 0 : index
    %60 = arith.index_cast %59 : i32 to index
    %c0_40 = arith.constant 0 : index
    %61 = vector.load %arg2[%c0_39, %60, %c0_40] : memref<1x328x8xf32, #tpu.memory_space<vmem>>, vector<1x144x8xf32>
    %62 = vector.shape_cast %61 : vector<1x144x8xf32> to vector<144x8xf32>
    %c56 = arith.constant 56 : index
    %c0_41 = arith.constant 0 : index
    %63 = vector.load %arg3[%c56, %c0_41] : memref<72x8xf32, #tpu.memory_space<vmem>>, vector<8x8xf32>
    %cst_42 = arith.constant dense<0.000000e+00> : vector<144x8xf32>
    %64 = tpu.matmul %62, %63, %cst_42 {dimension_numbers = #tpu.dot_dimension_numbers<[1], [0], [0], [1], [0, 0, 1, 1], [], []>} : vector<144x8xf32>, vector<8x8xf32>, vector<144x8xf32> -> vector<144x8xf32>
    %65 = arith.addf %57, %64 : vector<144x8xf32>
    %c36_i32_43 = arith.constant 36 : i32
    %66 = arith.addi %0, %c36_i32_43 : i32
    %c2_i32_44 = arith.constant 2 : i32
    %67 = arith.addi %66, %c2_i32_44 : i32
    %c0_45 = arith.constant 0 : index
    %68 = arith.index_cast %67 : i32 to index
    %c0_46 = arith.constant 0 : index
    %69 = vector.load %arg2[%c0_45, %68, %c0_46] : memref<1x328x8xf32, #tpu.memory_space<vmem>>, vector<1x144x8xf32>
    %70 = vector.shape_cast %69 : vector<1x144x8xf32> to vector<144x8xf32>
    %c64 = arith.constant 64 : index
    %c0_47 = arith.constant 0 : index
    %71 = vector.load %arg3[%c64, %c0_47] : memref<72x8xf32, #tpu.memory_space<vmem>>, vector<8x8xf32>
    %cst_48 = arith.constant dense<0.000000e+00> : vector<144x8xf32>
    %72 = tpu.matmul %70, %71, %cst_48 {dimension_numbers = #tpu.dot_dimension_numbers<[1], [0], [0], [1], [0, 0, 1, 1], [], []>} : vector<144x8xf32>, vector<8x8xf32>, vector<144x8xf32> -> vector<144x8xf32>
    %73 = arith.addf %65, %72 : vector<144x8xf32>
    %c0_49 = arith.constant 0 : index
    %c0_50 = arith.constant 0 : index
    %74 = vector.load %arg4[%c0_49, %c0_50] : memref<1x8xf32, #tpu.memory_space<vmem>>, vector<1x8xf32>
    %75 = vector.broadcast %74 : vector<1x8xf32> to vector<144x8xf32>
    %76 = arith.addf %73, %75 : vector<144x8xf32>
    %cst_51 = arith.constant 0.000000e+00 : f32
    %77 = vector.broadcast %cst_51 : f32 to vector<144x8xf32>
    %78 = arith.maximumf %76, %77 : vector<144x8xf32>
    %c0_52 = arith.constant 0 : index
    %c0_53 = arith.constant 0 : index
    %79 = vector.load %arg5[%c0_52, %c0_53] : memref<8x16xf32, #tpu.memory_space<vmem>>, vector<8x16xf32>
    %cst_54 = arith.constant dense<0.000000e+00> : vector<144x16xf32>
    %80 = tpu.matmul %78, %79, %cst_54 {dimension_numbers = #tpu.dot_dimension_numbers<[1], [0], [0], [1], [0, 0, 1, 1], [], []>} : vector<144x8xf32>, vector<8x16xf32>, vector<144x16xf32> -> vector<144x16xf32>
    %c0_55 = arith.constant 0 : index
    %c0_56 = arith.constant 0 : index
    %81 = vector.load %arg6[%c0_55, %c0_56] : memref<1x16xf32, #tpu.memory_space<vmem>>, vector<1x16xf32>
    %82 = vector.broadcast %81 : vector<1x16xf32> to vector<144x16xf32>
    %83 = arith.addf %80, %82 : vector<144x16xf32>
    %c0_57 = arith.constant 0 : index
    %c0_58 = arith.constant 0 : index
    %c0_59 = arith.constant 0 : index
    %84 = vector.load %arg7[%c0_57, %c0_58, %c0_59] : memref<1x144x16xf32, #tpu.memory_space<vmem>>, vector<1x144x16xf32>
    %85 = vector.shape_cast %84 : vector<1x144x16xf32> to vector<144x16xf32>
    %86 = vector.shape_cast %83 : vector<144x16xf32> to vector<1x144x16xf32>
    tpu.vector_store %arg7[%c0_57, %c0_58, %c0_59], %86 {strides = array<i32>} : memref<1x144x16xf32, #tpu.memory_space<vmem>>, vector<1x144x16xf32>,
    return
  }
  func.func @transform_0(%arg0: i32, %arg1: i32) -> (i32, i32, i32) {
    %c0_i32 = arith.constant 0 : i32
    %c0_i32_0 = arith.constant 0 : i32
    %c0_i32_1 = arith.constant 0 : i32
    return %arg0, %c0_i32, %c0_i32_0 : i32, i32, i32
  }
  func.func @transform_1(%arg0: i32, %arg1: i32) -> (i32, i32) {
    %c0_i32 = arith.constant 0 : i32
    %c0_i32_0 = arith.constant 0 : i32
    %c0_i32_1 = arith.constant 0 : i32
    return %c0_i32, %c0_i32_0 : i32, i32
  }
  func.func @transform_2(%arg0: i32, %arg1: i32) -> (i32, i32) {
    %c0_i32 = arith.constant 0 : i32
    %c0_i32_0 = arith.constant 0 : i32
    %c0_i32_1 = arith.constant 0 : i32
    return %c0_i32, %c0_i32_0 : i32, i32
  }
  func.func @transform_3(%arg0: i32, %arg1: i32) -> (i32, i32) {
    %c0_i32 = arith.constant 0 : i32
    %c0_i32_0 = arith.constant 0 : i32
    %c0_i32_1 = arith.constant 0 : i32
    return %c0_i32, %c0_i32_0 : i32, i32
  }
  func.func @transform_4(%arg0: i32, %arg1: i32) -> (i32, i32) {
    %c0_i32 = arith.constant 0 : i32
    %c0_i32_0 = arith.constant 0 : i32
    %c0_i32_1 = arith.constant 0 : i32
    return %c0_i32, %c0_i32_0 : i32, i32
  }
  func.func @transform_5(%arg0: i32, %arg1: i32) -> (i32, i32, i32) {
    %c0_i32 = arith.constant 0 : i32
    %c0_i32_0 = arith.constant 0 : i32
    return %arg0, %arg1, %c0_i32 : i32, i32, i32
  }
}

</mosaic_0001>

<bundles_post_ra>
// kernel: tpu_custom_call.1
= control target key start
LH: loop header
LB: loop body
LE: loop exit
PB: predicated region body
PF: predicated region fallthrough
CT: control target
= control target key end

     0   :  { %s3761_s18 = smov 0   ;;  %s3763_s19 = smov 0   ;;  %s4458_s0 = inlined_call_operand.vmem [shape: f32[2,328,8], index: 0, kind: input, shape index: {}]   ;;  %s4459_s1 = inlined_call_operand.vmem [shape: f32[72,8], index: 1, kind: input, shape index: {}]   ;;  %s4460_s2 = inlined_call_operand.vmem [shape: f32[1,8], index: 2, kind: input, shape index: {}]   ;;  %s4461_s3 = inlined_call_operand.vmem [shape: f32[8,16], index: 3, kind: input, shape index: {}]   ;;  %s4462_s4 = inlined_call_operand.vmem [shape: f32[1,16], index: 4, kind: input, shape index: {}]   ;;  %s4463_s5 = inlined_call_operand.vmem [shape: f32[2,288,16], index: 5, kind: output, shape index: {}]  }
   0x1   :  { %s3765_s20 = smov 0   ;;  %s3767_s21 = smov 0  }
   0x2   :  { %s3769_s22 = smov 0  }
   0x3 LB: > { %s24_s23 = sadd.s32 1, %s3721_s20  ;;  %s27_s24 = sadd.s32 1, %s3725_s21  ;;  %s3729_s22 = sphi %s3769_s22, %s15_s22   ;;  %s3725_s21 = sphi %s3767_s21, %s4481_s21   ;;  %s3721_s20 = sphi %s3765_s20, %s4480_s20   ;;  %s3717_s19 = sphi %s3763_s19, %s4479_s19   ;;  %s3713_s18 = sphi %s3761_s18, %s4478_s18  }
   0x4   : > { %p25_p0 = scmp.ge.s32.totalorder %s24_s23, 2  ;;  %p2838_p1 = scmp.ge.s32.totalorder %s3729_s22, 1 }
   0x5   : > { %p201_p2 = scmp.lt.s32.totalorder %s3729_s22, 5 }
   0x6   : > { %s4483_s23 = smov (%p25_p0, %s24_s23), 0  ;;  %s4485_s24 = smov (!%p25_p0, %s27_s24), %s3725_s21 }
   0x7   : > { %p202_p3 = pnand %p2838_p1, %p201_p2  ;;  %p29_p4 = scmp.ge.s32.totalorder %s4485_s24, 2 }
   0x9   : > { %s4487_s24 = smov (%p29_p4, %s4485_s24), 0  ;;  %205 = sbr.rel (%p202_p3) target bundleno = 599 (0x257), region = 40 }
   0xe   : > { %v289_v0 = vld [vmem:[%s4459_s1 + $0x8] sm:$0xff]  ;;  %v268_v1 = vld [vmem:[%s4459_s1] sm:$0xff]  ;;  %p233_p5 = scmp.lt.s32.totalorder %s3717_s19, 1  ;;  %v729_v2 = vld [vmem:[%s4459_s1 + $0x10] sm:$0xff]  ;;  %s248_s8 = smul.u32 144, %s3713_s18  ;;  %vm290_vm0 = vcmask 64512  }
   0xf   : > { %3359 = vmatprep.subr.mxu0 %v289_v0  ;;  %3388 = vmatprep.subr.mxu1 %v268_v1  ;;  %v977_v3 = vld [vmem:[%s4459_s1 + $0x18] sm:$0xff]  ;;  %v3827_v10 = vld [vmem:[%s4459_s1 + $0x20] sm:$0xff]  ;;  %v3832_v11 = vld [vmem:[%s4459_s1 + $0x28] sm:$0xff]  ;;  %s238_s10 = smul.u32 18, %s3713_s18  ;;  %vm2705_vm1 = vcmask 130048  }
  0x10   : > { %3360 = vmatpush3.msra.mxu0 %v289_v0  ;;  %s4489_s19 = smov (!%p233_p5, %s3717_s19), 1  ;;  %3389 = vmatpush3.msra.mxu1 %v268_v1  ;;  %v3910_v47 = vld [vmem:[%s4459_s1 + $0x30] sm:$0xff]  ;;  %v3915_v48 = vld [vmem:[%s4459_s1 + $0x38] sm:$0xff] }
  0x11   : > { %3417 = vmatprep.subr.mxu0 %v729_v2  ;;  %3446 = vmatprep.subr.mxu1 %v977_v3  ;;  %s3649_s9 = smul.u32 328, %s4489_s19  ;;  %p241_p6 = scmp.lt.s32.totalorder %s238_s10, 35 }
  0x12   : > { %s3650_s11 = smul.u32 36, %s4489_s19 }
  0x13   : > { %s237_s12 = scalar_lea.vmem %s4458_s0, %s3649_s9  ;;  %s4491_s10 = smov (!%p241_p6, %s238_s10), 35 }
  0x14   : > { %s3812_s13 = scalar_lea.vmem %s237_s12, %s248_s8  ;;  %s244_s12 = sadd.s32 %s3650_s11, %s4491_s10 }
  0x15   : > { %v2841_v4 = vld [vmem:[%s3812_s13 + $0x1] sm:$0xff]  ;;  %v2842_v6 = vld [vmem:[%s3812_s13 + $0x9] sm:$0xff]  ;;  %v2843_v8 = vld [vmem:[%s3812_s13 + $0x11] sm:$0xff] }
  0x16   : > { %v250_v5 = vld [vmem:[%s3812_s13] sm:$0xff]  ;;  %3361 = vmatprep.mubr.msk.f32.mxu0 %vm290_vm0, %v2841_v4  ;;  %v251_v7 = vld [vmem:[%s3812_s13 + $0x8] sm:$0xff]  ;;  %v252_v9 = vld [vmem:[%s3812_s13 + $0x10] sm:$0xff] }
  0x17   : > { %3390 = vmatprep.mubr.msk.f32.mxu1 %vm290_vm0, %v250_v5  ;;  %3362 = vmatmul.mubr.msk.f32.vlgmr.msra.gmra.mxu0 %vm290_vm0, %v2842_v6  ;;  %v2844_v12 = vld [vmem:[%s3812_s13 + $0x19] sm:$0xff]  ;;  %v2845_v14 = vld [vmem:[%s3812_s13 + $0x21] sm:$0xff]  ;;  %v2846_v16 = vld [vmem:[%s3812_s13 + $0x29] sm:$0xff] }
  0x18   : > { %3391 = vmatmul.mubr.msk.f32.vlgmr.msra.gmra.mxu1 %vm290_vm0, %v251_v7  ;;  %3418 = vmatpush3.msra.mxu0 %v729_v2  ;;  %v253_v13 = vld [vmem:[%s3812_s13 + $0x18] sm:$0xff]  ;;  %v254_v15 = vld [vmem:[%s3812_s13 + $0x20] sm:$0xff]  ;;  %v255_v17 = vld [vmem:[%s3812_s13 + $0x28] sm:$0xff] }
  0x19   : > { %3364 = vmatprep.mubr.msk.f32.mxu0 %vm290_vm0, %v2843_v8  ;;  %3393 = vmatprep.mubr.msk.f32.mxu1 %vm290_vm0, %v252_v9  ;;  %v2847_v18 = vld [vmem:[%s3812_s13 + $0x31] sm:$0xff]  ;;  %v2848_v20 = vld [vmem:[%s3812_s13 + $0x39] sm:$0xff]  ;;  %v2849_v22 = vld [vmem:[%s3812_s13 + $0x41] sm:$0xff] }
  0x1a   : > { %3447 = vmatpush3.msra.mxu1 %v977_v3  ;;  %3475 = vmatprep.subr.mxu0 %v3827_v10  ;;  %v256_v19 = vld [vmem:[%s3812_s13 + $0x30] sm:$0xff]  ;;  %v257_v21 = vld [vmem:[%s3812_s13 + $0x38] sm:$0xff]  ;;  %v258_v23 = vld [vmem:[%s3812_s13 + $0x40] sm:$0xff] }
  0x1b   : > { %3504 = vmatprep.subr.mxu1 %v3832_v11  ;;  %3365 = vmatmul.mubr.msk.f32.gmra.mxu0 %vm290_vm0, %v2844_v12  ;;  %v2850_v24 = vld [vmem:[%s3812_s13 + $0x49] sm:$0xff]  ;;  %v2851_v26 = vld [vmem:[%s3812_s13 + $0x51] sm:$0xff]  ;;  %v2852_v28 = vld [vmem:[%s3812_s13 + $0x59] sm:$0xff] }
  0x1c   : > { %3394 = vmatmul.mubr.msk.f32.gmra.mxu1 %vm290_vm0, %v253_v13  ;;  %3367 = vmatprep.mubr.msk.f32.mxu0 %vm290_vm0, %v2845_v14  ;;  %v259_v25 = vld [vmem:[%s3812_s13 + $0x48] sm:$0xff]  ;;  %v260_v27 = vld [vmem:[%s3812_s13 + $0x50] sm:$0xff]  ;;  %v261_v29 = vld [vmem:[%s3812_s13 + $0x58] sm:$0xff] }
  0x1d   : > { %3396 = vmatprep.mubr.msk.f32.mxu1 %vm290_vm0, %v254_v15  ;;  %v2853_v30 = vld [vmem:[%s3812_s13 + $0x61] sm:$0xff]  ;;  %v2854_v32 = vld [vmem:[%s3812_s13 + $0x69] sm:$0xff]  ;;  %v2855_v34 = vld [vmem:[%s3812_s13 + $0x71] sm:$0xff] }
  0x1e   : > { %v262_v31 = vld [vmem:[%s3812_s13 + $0x60] sm:$0xff]  ;;  %v263_v33 = vld [vmem:[%s3812_s13 + $0x68] sm:$0xff]  ;;  %v264_v35 = vld [vmem:[%s3812_s13 + $0x70] sm:$0xff] }
  0x1f   : > { %3368 = vmatmul.mubr.msk.f32.gmra.mxu0 %vm290_vm0, %v2846_v16  ;;  %v2856_v36 = vld [vmem:[%s3812_s13 + $0x79] sm:$0xff]  ;;  %v2857_v38 = vld [vmem:[%s3812_s13 + $0x81] sm:$0xff]  ;;  %v2858_v40 = vld [vmem:[%s3812_s13 + $0x89] sm:$0xff] }
  0x20   : > { %3397 = vmatmul.mubr.msk.f32.gmra.mxu1 %vm290_vm0, %v255_v17  ;;  %3370 = vmatprep.mubr.msk.f32.mxu0 %vm290_vm0, %v2847_v18  ;;  %v265_v37 = vld [vmem:[%s3812_s13 + $0x78] sm:$0xff]  ;;  %v266_v39 = vld [vmem:[%s3812_s13 + $0x80] sm:$0xff]  ;;  %v267_v41 = vld [vmem:[%s3812_s13 + $0x88] sm:$0xff] }
  0x21   : > { %3399 = vmatprep.mubr.msk.f32.mxu1 %vm290_vm0, %v256_v19  ;;  %v2895_v42 = vld [vmem:[%s3812_s13 + $0x2] sm:$0xff]  ;;  %v2931_v43 = vld [vmem:[%s3812_s13 + $0x12] sm:$0xff]  ;;  %v2896_v44 = vld [vmem:[%s3812_s13 + $0xa] sm:$0xff] }
  0x22   : > { %v2932_v45 = vld [vmem:[%s3812_s13 + $0x1a] sm:$0xff]  ;;  %v2933_v46 = vld [vmem:[%s3812_s13 + $0x22] sm:$0xff]  ;;  %v2934_v49 = vld [vmem:[%s3812_s13 + $0x2a] sm:$0xff] }
  0x23   : > { %3371 = vmatmul.mubr.msk.f32.gmra.mxu0 %vm290_vm0, %v2848_v20  ;;  %v2935_v50 = vld [vmem:[%s3812_s13 + $0x32] sm:$0xff]  ;;  %v2936_v51 = vld [vmem:[%s3812_s13 + $0x3a] sm:$0xff]  ;;  %v2937_v52 = vld [vmem:[%s3812_s13 + $0x42] sm:$0xff] }
  0x24   : > { %3400 = vmatmul.mubr.msk.f32.gmra.mxu1 %vm290_vm0, %v257_v21  ;;  %3373 = vmatprep.mubr.msk.f32.mxu0 %vm290_vm0, %v2849_v22  ;;  %v2938_v53 = vld [vmem:[%s3812_s13 + $0x4a] sm:$0xff]  ;;  %v2939_v54 = vld [vmem:[%s3812_s13 + $0x52] sm:$0xff]  ;;  %v2940_v55 = vld [vmem:[%s3812_s13 + $0x5a] sm:$0xff] }
  0x25   : > { %3402 = vmatprep.mubr.msk.f32.mxu1 %vm290_vm0, %v258_v23  ;;  %v2941_v56 = vld [vmem:[%s3812_s13 + $0x62] sm:$0xff]  ;;  %v2942_v57 = vld [vmem:[%s3812_s13 + $0x6a] sm:$0xff]  ;;  %v2943_v58 = vld [vmem:[%s3812_s13 + $0x72] sm:$0xff] }
  0x26   : > { %v2944_v59 = vld [vmem:[%s3812_s13 + $0x7a] sm:$0xff]  ;;  %v2945_v60 = vld [vmem:[%s3812_s13 + $0x82] sm:$0xff]  ;;  %v2946_v61 = vld [vmem:[%s3812_s13 + $0x8a] sm:$0xff] }
  0x27   : > { %3374 = vmatmul.mubr.msk.f32.gmra.mxu0 %vm290_vm0, %v2850_v24  ;;  %v2947_v62 = vld [vmem:[%s3812_s13 + $0x92] sm:$0xff]  ;;  %v2948_v63 = vld [vmem:[%s3812_s13 + $0x9a] sm:$0xff]  ;;  %v2969_v4 = vld [vmem:[%s3812_s13 + $0x23] sm:$0xff] }
  0x28   : > { %3403 = vmatmul.mubr.msk.f32.gmra.mxu1 %vm290_vm0, %v259_v25  ;;  %3376 = vmatprep.mubr.msk.f32.mxu0 %vm290_vm0, %v2851_v26  ;;  %v2967_v0 = vld [vmem:[%s3812_s13 + $0x13] sm:$0xff]  ;;  %v2968_v2 = vld [vmem:[%s3812_s13 + $0x1b] sm:$0xff]  ;;  %v3976_v5 = vld [vmem:[%s3812_s13 + $0x24] sm:$0xff] }
  0x29   : > { %3405 = vmatprep.mubr.msk.f32.mxu1 %vm290_vm0, %v260_v27  ;;  %v3003_v1 = vld [vmem:[%s3812_s13 + $0x14] sm:$0xff]  ;;  %v3004_v3 = vld [vmem:[%s3812_s13 + $0x1c] sm:$0xff]  ;;  %v2970_v7 = vld [vmem:[%s3812_s13 + $0x2b] sm:$0xff] }
  0x2a   : > { %v3983_v6 = vld [vmem:[%s4459_s1 + $0x40] sm:$0xff]  ;;  %v3989_v8 = vld [vmem:[%s3812_s13 + $0x2c] sm:$0xff]  ;;  %v3011_v18 = vld [vmem:[%s3812_s13 + $0x54] sm:$0xff] }
  0x2b   : > { %3377 = vmatmul.mubr.msk.f32.gmra.mxu0 %vm290_vm0, %v2852_v28  ;;  %v2971_v9 = vld [vmem:[%s3812_s13 + $0x33] sm:$0xff]  ;;  %v4007_v12 = vld [vmem:[%s3812_s13 + $0x3c] sm:$0xff]  ;;  %v4011_v14 = vld [vmem:[%s3812_s13 + $0x44] sm:$0xff] }
  0x2c   : > { %3406 = vmatmul.mubr.msk.f32.gmra.mxu1 %vm290_vm0, %v261_v29  ;;  %3379 = vmatprep.mubr.msk.f32.mxu0 %vm290_vm0, %v2853_v30  ;;  %v2973_v13 = vld [vmem:[%s3812_s13 + $0x43] sm:$0xff]  ;;  %v2974_v15 = vld [vmem:[%s3812_s13 + $0x4b] sm:$0xff]  ;;  %v2975_v17 = vld [vmem:[%s3812_s13 + $0x53] sm:$0xff] }
  0x2d   : > { %3408 = vmatprep.mubr.msk.f32.mxu1 %vm290_vm0, %v262_v31  ;;  %v3010_v16 = vld [vmem:[%s3812_s13 + $0x4c] sm:$0xff]  ;;  %v2976_v19 = vld [vmem:[%s3812_s13 + $0x5b] sm:$0xff]  ;;  %v2977_v21 = vld [vmem:[%s3812_s13 + $0x63] sm:$0xff] }
  0x2e   : > { %v3012_v20 = vld [vmem:[%s3812_s13 + $0x5c] sm:$0xff]  ;;  %v3013_v22 = vld [vmem:[%s3812_s13 + $0x64] sm:$0xff]  ;;  %v3014_v24 = vld [vmem:[%s3812_s13 + $0x6c] sm:$0xff] }
  0x2f   : > { %3380 = vmatmul.mubr.msk.f32.gmra.mxu0 %vm290_vm0, %v2854_v32  ;;  %v2978_v23 = vld [vmem:[%s3812_s13 + $0x6b] sm:$0xff]  ;;  %v2979_v25 = vld [vmem:[%s3812_s13 + $0x73] sm:$0xff]  ;;  %v2980_v27 = vld [vmem:[%s3812_s13 + $0x7b] sm:$0xff] }
  0x30   : > { %3409 = vmatmul.mubr.msk.f32.gmra.mxu1 %vm290_vm0, %v263_v33  ;;  %3382 = vmatprep.mubr.msk.f32.mxu0 %vm290_vm0, %v2855_v34  ;;  %v3015_v26 = vld [vmem:[%s3812_s13 + $0x74] sm:$0xff]  ;;  %v3016_v28 = vld [vmem:[%s3812_s13 + $0x7c] sm:$0xff]  ;;  %v3017_v30 = vld [vmem:[%s3812_s13 + $0x84] sm:$0xff] }
  0x31   : > { %3411 = vmatprep.mubr.msk.f32.mxu1 %vm290_vm0, %v264_v35  ;;  %v2981_v29 = vld [vmem:[%s3812_s13 + $0x83] sm:$0xff]  ;;  %v2982_v31 = vld [vmem:[%s3812_s13 + $0x8b] sm:$0xff]  ;;  %v2983_v33 = vld [vmem:[%s3812_s13 + $0x93] sm:$0xff] }
  0x32   : > { %v3018_v32 = vld [vmem:[%s3812_s13 + $0x8c] sm:$0xff]  ;;  %v3019_v34 = vld [vmem:[%s3812_s13 + $0x94] sm:$0xff] }
  0x33   : > { %3383 = vmatmul.mubr.msk.f32.gmra.mxu0 %vm290_vm0, %v2856_v36  ;;  %v2984_v35 = vld [vmem:[%s3812_s13 + $0x9b] sm:$0xff] }
  0x34   : > { %3412 = vmatmul.mubr.msk.f32.gmra.mxu1 %vm290_vm0, %v265_v37  ;;  %3385 = vmatprep.mubr.msk.f32.mxu0 %vm290_vm0, %v2857_v38  ;;  %v3020_v36 = vld [vmem:[%s3812_s13 + $0x9c] sm:$0xff]  ;;  %v3075_v37 = vld [vmem:[%s3812_s13 + $0x25] sm:$0xff]  ;;  %v3076_v38 = vld [vmem:[%s3812_s13 + $0x2d] sm:$0xff] }
  0x35   : > { %3414 = vmatprep.mubr.msk.f32.mxu1 %vm290_vm0, %v266_v39  ;;  %v3077_v39 = vld [vmem:[%s3812_s13 + $0x35] sm:$0xff] }
  0x37   : > { %3386 = vmatmul.mubr.msk.f32.gmra.mxu0 %vm290_vm0, %v2858_v40  ;;  %v3078_v40 = vld [vmem:[%s3812_s13 + $0x3d] sm:$0xff] }
  0x38   : > { %3415 = vmatmul.mubr.msk.f32.gmra.mxu1 %vm290_vm0, %v267_v41  ;;  %3419 = vmatprep.mubr.msk.f32.mxu0 %vm290_vm0, %v2895_v42  ;;  %v3079_v41 = vld [vmem:[%s3812_s13 + $0x45] sm:$0xff]  ;;  %v3080_v42 = vld [vmem:[%s3812_s13 + $0x4d] sm:$0xff] }
  0x39   : > { %3448 = vmatprep.mubr.msk.f32.mxu1 %vm290_vm0, %v2931_v43 }
  0x3b   : > { %3420 = vmatmul.mubr.msk.f32.vlgmr.msra.gmra.mxu0 %vm290_vm0, %v2896_v44  ;;  %v3082_v44 = vld [vmem:[%s3812_s13 + $0x5d] sm:$0xff] }
  0x3c   : > { %3449 = vmatmul.mubr.msk.f32.vlgmr.msra.gmra.mxu1 %vm290_vm0, %v2932_v45  ;;  %3476 = vmatpush3.msra.mxu0 %v3827_v10  ;;  %v3995_v10 = vld [vmem:[%s3812_s13 + $0x34] sm:$0xff] }
  0x3d   : > { %3422 = vmatprep.mubr.msk.f32.mxu0 %vm290_vm0, %v2931_v43  ;;  %3451 = vmatprep.mubr.msk.f32.mxu1 %vm290_vm0, %v2933_v46  ;;  %v3081_v43 = vld [vmem:[%s3812_s13 + $0x55] sm:$0xff] }
  0x3e   : > { %3505 = vmatpush3.msra.mxu1 %v3832_v11  ;;  %3533 = vmatprep.subr.mxu0 %v3910_v47  ;;  %v2972_v11 = vld [vmem:[%s3812_s13 + $0x3b] sm:$0xff] }
  0x3f   : > { %3562 = vmatprep.subr.mxu1 %v3915_v48  ;;  %3423 = vmatmul.mubr.msk.f32.gmra.mxu0 %vm290_vm0, %v2932_v45  ;;  %v3083_v45 = vld [vmem:[%s3812_s13 + $0x65] sm:$0xff] }
  0x40   : > { %3452 = vmatmul.mubr.msk.f32.gmra.mxu1 %vm290_vm0, %v2934_v49  ;;  %3425 = vmatprep.mubr.msk.f32.mxu0 %vm290_vm0, %v2933_v46  ;;  %v3084_v46 = vld [vmem:[%s3812_s13 + $0x6d] sm:$0xff] }
  0x41   : > { %3454 = vmatprep.mubr.msk.f32.mxu1 %vm290_vm0, %v2935_v50 }
  0x43   : > { %3426 = vmatmul.mubr.msk.f32.gmra.mxu0 %vm290_vm0, %v2934_v49  ;;  %v3087_v49 = vld [vmem:[%s3812_s13 + $0x85] sm:$0xff] }
  0x44   : > { %3455 = vmatmul.mubr.msk.f32.gmra.mxu1 %vm290_vm0, %v2936_v51  ;;  %3428 = vmatprep.mubr.msk.f32.mxu0 %vm290_vm0, %v2935_v50  ;;  %v3088_v50 = vld [vmem:[%s3812_s13 + $0x8d] sm:$0xff] }
  0x45   : > { %3457 = vmatprep.mubr.msk.f32.mxu1 %vm290_vm0, %v2937_v52 }
  0x47   : > { %3429 = vmatmul.mubr.msk.f32.gmra.mxu0 %vm290_vm0, %v2936_v51  ;;  %v3089_v51 = vld [vmem:[%s3812_s13 + $0x95] sm:$0xff] }
  0x48   : > { %3458 = vmatmul.mubr.msk.f32.gmra.mxu1 %vm290_vm0, %v2938_v53  ;;  %3431 = vmatprep.mubr.msk.f32.mxu0 %vm290_vm0, %v2937_v52  ;;  %v3090_v52 = vld [vmem:[%s3812_s13 + $0x9d] sm:$0xff] }
  0x49   : > { %3460 = vmatprep.mubr.msk.f32.mxu1 %vm290_vm0, %v2939_v54 }
  0x4b   : > { %3432 = vmatmul.mubr.msk.f32.gmra.mxu0 %vm290_vm0, %v2938_v53  ;;  %v3055_v53 = vld [vmem:[%s3812_s13 + $0xa4] sm:$0xff] }
  0x4c   : > { %3461 = vmatmul.mubr.msk.f32.gmra.mxu1 %vm290_vm0, %v2940_v55  ;;  %3434 = vmatprep.mubr.msk.f32.mxu0 %vm290_vm0, %v2939_v54  ;;  %v3091_v54 = vld [vmem:[%s3812_s13 + $0xa5] sm:$0xff] }
  0x4d   : > { %3463 = vmatprep.mubr.msk.f32.mxu1 %vm290_vm0, %v2941_v56 }
  0x4f   : > { %3435 = vmatmul.mubr.msk.f32.gmra.mxu0 %vm290_vm0, %v2940_v55  ;;  %v3056_v55 = vld [vmem:[%s3812_s13 + $0xac] sm:$0xff] }
  0x50   : > { %3464 = vmatmul.mubr.msk.f32.gmra.mxu1 %vm290_vm0, %v2942_v57  ;;  %3437 = vmatprep.mubr.msk.f32.mxu0 %vm290_vm0, %v2941_v56  ;;  %v3092_v56 = vld [vmem:[%s3812_s13 + $0xad] sm:$0xff] }
  0x51   : > { %3466 = vmatprep.mubr.msk.f32.mxu1 %vm290_vm0, %v2943_v58 }
  0x53   : > { %3438 = vmatmul.mubr.msk.f32.gmra.mxu0 %vm290_vm0, %v2942_v57  ;;  %v3111_v57 = vld [vmem:[%s3812_s13 + $0x26] sm:$0xff] }
  0x54   : > { %3467 = vmatmul.mubr.msk.f32.gmra.mxu1 %vm290_vm0, %v2944_v59  ;;  %3440 = vmatprep.mubr.msk.f32.mxu0 %vm290_vm0, %v2943_v58  ;;  %v3112_v58 = vld [vmem:[%s3812_s13 + $0x2e] sm:$0xff] }
  0x55   : > { %3469 = vmatprep.mubr.msk.f32.mxu1 %vm290_vm0, %v2945_v60 }
  0x57   : > { %3441 = vmatmul.mubr.msk.f32.gmra.mxu0 %vm290_vm0, %v2944_v59  ;;  %v3113_v59 = vld [vmem:[%s3812_s13 + $0x36] sm:$0xff] }
  0x58   : > { %3470 = vmatmul.mubr.msk.f32.gmra.mxu1 %vm290_vm0, %v2946_v61  ;;  %3443 = vmatprep.mubr.msk.f32.mxu0 %vm290_vm0, %v2945_v60  ;;  %v3114_v60 = vld [vmem:[%s3812_s13 + $0x3e] sm:$0xff] }
  0x59   : > { %3472 = vmatprep.mubr.msk.f32.mxu1 %vm290_vm0, %v2947_v62  ;;  %v3116_v62 = vld [vmem:[%s3812_s13 + $0x4e] sm:$0xff] }
  0x5b   : > { %3444 = vmatmul.mubr.msk.f32.gmra.mxu0 %vm290_vm0, %v2946_v61  ;;  %v3115_v61 = vld [vmem:[%s3812_s13 + $0x46] sm:$0xff] }
  0x5c   : > { %3473 = vmatmul.mubr.msk.f32.gmra.mxu1 %vm290_vm0, %v2948_v63  ;;  %3477 = vmatprep.mubr.msk.f32.mxu0 %vm290_vm0, %v2967_v0  ;;  %v3117_v63 = vld [vmem:[%s3812_s13 + $0x56] sm:$0xff]  ;;  %v3118_v0 = vld [vmem:[%s3812_s13 + $0x5e] sm:$0xff] }
  0x5d   : > { %3506 = vmatprep.mubr.msk.f32.mxu1 %vm290_vm0, %v3003_v1  ;;  %v3119_v1 = vld [vmem:[%s3812_s13 + $0x66] sm:$0xff] }
  0x5f   : > { %3478 = vmatmul.mubr.msk.f32.vlgmr.msra.gmra.mxu0 %vm290_vm0, %v2968_v2  ;;  %v3120_v2 = vld [vmem:[%s3812_s13 + $0x6e] sm:$0xff] }
  0x60   : > { %3507 = vmatmul.mubr.msk.f32.vlgmr.msra.gmra.mxu1 %vm290_vm0, %v3004_v3  ;;  %3534 = vmatpush3.msra.mxu0 %v3910_v47  ;;  %v3085_v47 = vld [vmem:[%s3812_s13 + $0x75] sm:$0xff] }
  0x61   : > { %3480 = vmatprep.mubr.msk.f32.mxu0 %vm290_vm0, %v2969_v4  ;;  %3509 = vmatprep.mubr.msk.f32.mxu1 %vm290_vm0, %v3976_v5  ;;  %v3121_v3 = vld [vmem:[%s3812_s13 + $0x76] sm:$0xff]  ;;  %v3122_v4 = vld [vmem:[%s3812_s13 + $0x7e] sm:$0xff] }
  0x62   : > { %3563 = vmatpush3.msra.mxu1 %v3915_v48  ;;  %3591 = vmatprep.subr.mxu0 %v3983_v6  ;;  %v3086_v48 = vld [vmem:[%s3812_s13 + $0x7d] sm:$0xff] }
  0x63   : > { %3481 = vmatmul.mubr.msk.f32.gmra.mxu0 %vm290_vm0, %v2970_v7  ;;  %v3125_v7 = vld [vmem:[%s3812_s13 + $0x96] sm:$0xff] }
  0x64   : > { %3510 = vmatmul.mubr.msk.f32.gmra.mxu1 %vm290_vm0, %v3989_v8  ;;  %3483 = vmatprep.mubr.msk.f32.mxu0 %vm290_vm0, %v2971_v9  ;;  %v3127_v9 = vld [vmem:[%s3812_s13 + $0xa6] sm:$0xff] }
  0x65   : > { %3512 = vmatprep.mubr.msk.f32.mxu1 %vm290_vm0, %v3995_v10 }
  0x67   : > { %3484 = vmatmul.mubr.msk.f32.gmra.mxu0 %vm290_vm0, %v2972_v11  ;;  %v2488_v11 = vld [vmem:[%s4461_s3] sm:$0xff] }
  0x68   : > { %3513 = vmatmul.mubr.msk.f32.gmra.mxu1 %vm290_vm0, %v4007_v12  ;;  %3486 = vmatprep.mubr.msk.f32.mxu0 %vm290_vm0, %v2973_v13 }
  0x69   : > { %3515 = vmatprep.mubr.msk.f32.mxu1 %vm290_vm0, %v4011_v14  ;;  %3620 = vmatprep.subr.mxu1 %v2488_v11 }
  0x6b   : > { %3487 = vmatmul.mubr.msk.f32.gmra.mxu0 %vm290_vm0, %v2974_v15 }
  0x6c   : > { %3516 = vmatmul.mubr.msk.f32.gmra.mxu1 %vm290_vm0, %v3010_v16  ;;  %3489 = vmatprep.mubr.msk.f32.mxu0 %vm290_vm0, %v2975_v17 }
  0x6d   : > { %3518 = vmatprep.mubr.msk.f32.mxu1 %vm290_vm0, %v3011_v18 }
  0x6f   : > { %3490 = vmatmul.mubr.msk.f32.gmra.mxu0 %vm290_vm0, %v2976_v19 }
  0x70   : > { %3519 = vmatmul.mubr.msk.f32.gmra.mxu1 %vm290_vm0, %v3012_v20  ;;  %3492 = vmatprep.mubr.msk.f32.mxu0 %vm290_vm0, %v2977_v21 }
  0x71   : > { %3521 = vmatprep.mubr.msk.f32.mxu1 %vm290_vm0, %v3013_v22 }
  0x73   : > { %3493 = vmatmul.mubr.msk.f32.gmra.mxu0 %vm290_vm0, %v2978_v23 }
  0x74   : > { %3522 = vmatmul.mubr.msk.f32.gmra.mxu1 %vm290_vm0, %v3014_v24  ;;  %3495 = vmatprep.mubr.msk.f32.mxu0 %vm290_vm0, %v2979_v25 }
  0x75   : > { %3524 = vmatprep.mubr.msk.f32.mxu1 %vm290_vm0, %v3015_v26 }
  0x77   : > { %3496 = vmatmul.mubr.msk.f32.gmra.mxu0 %vm290_vm0, %v2980_v27 }
  0x78   : > { %3525 = vmatmul.mubr.msk.f32.gmra.mxu1 %vm290_vm0, %v3016_v28  ;;  %3498 = vmatprep.mubr.msk.f32.mxu0 %vm290_vm0, %v2981_v29 }
  0x79   : > { %3527 = vmatprep.mubr.msk.f32.mxu1 %vm290_vm0, %v3017_v30 }
  0x7b   : > { %3499 = vmatmul.mubr.msk.f32.gmra.mxu0 %vm290_vm0, %v2982_v31 }
  0x7c   : > { %3528 = vmatmul.mubr.msk.f32.gmra.mxu1 %vm290_vm0, %v3018_v32  ;;  %3501 = vmatprep.mubr.msk.f32.mxu0 %vm290_vm0, %v2983_v33 }
  0x7d   : > { %3530 = vmatprep.mubr.msk.f32.mxu1 %vm290_vm0, %v3019_v34 }
  0x7f   : > { %3502 = vmatmul.mubr.msk.f32.gmra.mxu0 %vm290_vm0, %v2984_v35 }
  0x80   : > { %3531 = vmatmul.mubr.msk.f32.gmra.mxu1 %vm290_vm0, %v3020_v36  ;;  %3535 = vmatprep.mubr.msk.f32.mxu0 %vm290_vm0, %v3976_v5  ;;  %v3123_v5 = vld [vmem:[%s3812_s13 + $0x86] sm:$0xff] }
  0x81   : > { %3564 = vmatprep.mubr.msk.f32.mxu1 %vm290_vm0, %v3075_v37 }
  0x83   : > { %3536 = vmatmul.mubr.msk.f32.vlgmr.msra.gmra.mxu0 %vm290_vm0, %v3989_v8  ;;  %v3126_v8 = vld [vmem:[%s3812_s13 + $0x9e] sm:$0xff] }
  0x84   : > { %3565 = vmatmul.mubr.msk.f32.vlgmr.msra.gmra.mxu1 %vm290_vm0, %v3076_v38  ;;  %3592 = vmatpush3.msra.mxu0 %v3983_v6  ;;  %v3124_v6 = vld [vmem:[%s3812_s13 + $0x8e] sm:$0xff] }
  0x85   : > { %3538 = vmatprep.mubr.msk.f32.mxu0 %vm290_vm0, %v3995_v10  ;;  %3567 = vmatprep.mubr.msk.f32.mxu1 %vm290_vm0, %v3077_v39  ;;  %v3128_v10 = vld [vmem:[%s3812_s13 + $0xae] sm:$0xff]  ;;  %s2840_s13 = sshll.u32 %s244_s12, 3 }
  0x86   : > { %3621 = vmatpush3.msra.mxu1 %v2488_v11  ;;  %s4405_s25 = scalar_lea.vmem %s4463_s5, %s2840_s13 }
  0x87   : > { %3539 = vmatmul.mubr.msk.f32.gmra.mxu0 %vm290_vm0, %v4007_v12 }
  0x88   : > { %3568 = vmatmul.mubr.msk.f32.gmra.mxu1 %vm290_vm0, %v3078_v40  ;;  %3541 = vmatprep.mubr.msk.f32.mxu0 %vm290_vm0, %v4011_v14 }
  0x89   : > { %3570 = vmatprep.mubr.msk.f32.mxu1 %vm290_vm0, %v3079_v41 }
  0x8b   : > { %3542 = vmatmul.mubr.msk.f32.gmra.mxu0 %vm290_vm0, %v3010_v16 }
  0x8c   : > { %3571 = vmatmul.mubr.msk.f32.gmra.mxu1 %vm290_vm0, %v3080_v42  ;;  %3544 = vmatprep.mubr.msk.f32.mxu0 %vm290_vm0, %v3011_v18 }
  0x8d   : > { %3573 = vmatprep.mubr.msk.f32.mxu1 %vm290_vm0, %v3081_v43 }
  0x8f   : > { %3545 = vmatmul.mubr.msk.f32.gmra.mxu0 %vm290_vm0, %v3012_v20 }
  0x90   : > { %3574 = vmatmul.mubr.msk.f32.gmra.mxu1 %vm290_vm0, %v3082_v44  ;;  %3547 = vmatprep.mubr.msk.f32.mxu0 %vm290_vm0, %v3013_v22 }
  0x91   : > { %3576 = vmatprep.mubr.msk.f32.mxu1 %vm290_vm0, %v3083_v45 }
  0x93   : > { %3548 = vmatmul.mubr.msk.f32.gmra.mxu0 %vm290_vm0, %v3014_v24 }
  0x94   : > { %3577 = vmatmul.mubr.msk.f32.gmra.mxu1 %vm290_vm0, %v3084_v46  ;;  %3550 = vmatprep.mubr.msk.f32.mxu0 %vm290_vm0, %v3015_v26 }
  0x95   : > { %3579 = vmatprep.mubr.msk.f32.mxu1 %vm290_vm0, %v3085_v47 }
  0x97   : > { %3551 = vmatmul.mubr.msk.f32.gmra.mxu0 %vm290_vm0, %v3016_v28 }
  0x98   : > { %3580 = vmatmul.mubr.msk.f32.gmra.mxu1 %vm290_vm0, %v3086_v48  ;;  %3553 = vmatprep.mubr.msk.f32.mxu0 %vm290_vm0, %v3017_v30 }
  0x99   : > { %3582 = vmatprep.mubr.msk.f32.mxu1 %vm290_vm0, %v3087_v49 }
  0x9b   : > { %3554 = vmatmul.mubr.msk.f32.gmra.mxu0 %vm290_vm0, %v3018_v32 }
  0x9c   : > { %3583 = vmatmul.mubr.msk.f32.gmra.mxu1 %vm290_vm0, %v3088_v50  ;;  %3556 = vmatprep.mubr.msk.f32.mxu0 %vm290_vm0, %v3019_v34 }
  0x9d   : > { %3585 = vmatprep.mubr.msk.f32.mxu1 %vm290_vm0, %v3089_v51 }
  0x9f   : > { %3557 = vmatmul.mubr.msk.f32.gmra.mxu0 %vm290_vm0, %v3020_v36 }
  0xa0   : > { %3586 = vmatmul.mubr.msk.f32.gmra.mxu1 %vm290_vm0, %v3090_v52  ;;  %3559 = vmatprep.mubr.msk.f32.mxu0 %vm290_vm0, %v3055_v53 }
  0xa1   : > { %3588 = vmatprep.mubr.msk.f32.mxu1 %vm290_vm0, %v3091_v54 }
  0xa3   : > { %3560 = vmatmul.mubr.msk.f32.gmra.mxu0 %vm290_vm0, %v3056_v55 }
  0xa4   : > { %3589 = vmatmul.mubr.msk.f32.gmra.mxu1 %vm290_vm0, %v3092_v56  ;;  %3593 = vmatprep.mubr.msk.f32.mxu0 %vm290_vm0, %v3111_v57 }
  0xa7   : > { %3594 = vmatmul.mubr.msk.f32.vlgmr.msra.gmra.mxu0 %vm290_vm0, %v3112_v58 }
  0xa8   : > { %3596 = vmatprep.mubr.msk.f32.mxu0 %vm290_vm0, %v3113_v59 }
  0xab   : > { %3597 = vmatmul.mubr.msk.f32.gmra.mxu0 %vm290_vm0, %v3114_v60 }
  0xac   : > { %3599 = vmatprep.mubr.msk.f32.mxu0 %vm290_vm0, %v3115_v61 }
  0xaf   : > { %3600 = vmatmul.mubr.msk.f32.gmra.mxu0 %vm290_vm0, %v3116_v62 }
  0xb0   : > { %3602 = vmatprep.mubr.msk.f32.mxu0 %vm290_vm0, %v3117_v63 }
  0xb3   : > { %3603 = vmatmul.mubr.msk.f32.gmra.mxu0 %vm290_vm0, %v3118_v0 }
  0xb4   : > { %3605 = vmatprep.mubr.msk.f32.mxu0 %vm290_vm0, %v3119_v1 }
  0xb7   : > { %3606 = vmatmul.mubr.msk.f32.gmra.mxu0 %vm290_vm0, %v3120_v2 }
  0xb8   : > { %3608 = vmatprep.mubr.msk.f32.mxu0 %vm290_vm0, %v3121_v3 }
  0xbb   : > { %3609 = vmatmul.mubr.msk.f32.gmra.mxu0 %vm290_vm0, %v3122_v4 }
  0xbc   : > { %3611 = vmatprep.mubr.msk.f32.mxu0 %vm290_vm0, %v3123_v5 }
  0xbf   : > { %3612 = vmatmul.mubr.msk.f32.gmra.mxu0 %vm290_vm0, %v3124_v6 }
  0xc0   : > { %3614 = vmatprep.mubr.msk.f32.mxu0 %vm290_vm0, %v3125_v7 }
  0xc3   : > { %3615 = vmatmul.mubr.msk.f32.gmra.mxu0 %vm290_vm0, %v3126_v8 }
  0xc4   : > { %3617 = vmatprep.mubr.msk.f32.mxu0 %vm290_vm0, %v3127_v9 }
  0xc7   : > { %3618 = vmatmul.mubr.msk.f32.gmra.mxu0 %vm290_vm0, %v3128_v10 }
  0xd7   : > { %v3363_v12 = vpop.f32.mrf.mxu0 }
  0xd8   : > { %v3392_v13 = vpop.f32.mrf.mxu1 }
  0xd9   : > { %v626_v14 = vadd.f32 %v3392_v13, %v3363_v12  ;;  %v411_v15 = vpop.f32.mrf.mxu0 }
  0xda   : > { %v620_v16 = vpop.f32.mrf.mxu1 }
  0xdb   : > { %v621_v17 = vadd.f32 %v620_v16, %v411_v15  ;;  %v3366_v18 = vpop.f32.mrf.mxu0 }
  0xdc   : > { %v3395_v19 = vpop.f32.mrf.mxu1 }
  0xdd   : > { %v636_v20 = vadd.f32 %v3395_v19, %v3366_v18  ;;  %v421_v21 = vpop.f32.mrf.mxu0 }
  0xde   : > { %v630_v22 = vpop.f32.mrf.mxu1 }
  0xdf   : > { %v631_v23 = vadd.f32 %v630_v22, %v421_v21  ;;  %v3369_v24 = vpop.f32.mrf.mxu0 }
  0xe0   : > { %v3398_v25 = vpop.f32.mrf.mxu1 }
  0xe1   : > { %v646_v26 = vadd.f32 %v3398_v25, %v3369_v24  ;;  %v431_v27 = vpop.f32.mrf.mxu0 }
  0xe2   : > { %v640_v28 = vpop.f32.mrf.mxu1 }
  0xe3   : > { %v641_v29 = vadd.f32 %v640_v28, %v431_v27  ;;  %v3372_v30 = vpop.f32.mrf.mxu0 }
  0xe4   : > { %v3401_v31 = vpop.f32.mrf.mxu1 }
  0xe5   : > { %v656_v32 = vadd.f32 %v3401_v31, %v3372_v30  ;;  %v441_v33 = vpop.f32.mrf.mxu0 }
  0xe6   : > { %v650_v34 = vpop.f32.mrf.mxu1 }
  0xe7   : > { %v651_v35 = vadd.f32 %v650_v34, %v441_v33  ;;  %v3375_v36 = vpop.f32.mrf.mxu0 }
  0xe8   : > { %v3404_v37 = vpop.f32.mrf.mxu1 }
  0xe9   : > { %v666_v38 = vadd.f32 %v3404_v37, %v3375_v36  ;;  %v451_v39 = vpop.f32.mrf.mxu0 }
  0xea   : > { %v660_v40 = vpop.f32.mrf.mxu1 }
  0xeb   : > { %v661_v41 = vadd.f32 %v660_v40, %v451_v39  ;;  %v3378_v42 = vpop.f32.mrf.mxu0 }
  0xec   : > { %v3407_v43 = vpop.f32.mrf.mxu1 }
  0xed   : > { %v4164_v44 = vadd.f32 %v3407_v43, %v3378_v42  ;;  %v461_v45 = vpop.f32.mrf.mxu0 }
  0xee   : > { %v670_v46 = vpop.f32.mrf.mxu1 }
  0xef   : > { %v4166_v47 = vadd.f32 %v670_v46, %v461_v45  ;;  %v3381_v48 = vpop.f32.mrf.mxu0 }
  0xf0   : > { %v3410_v49 = vpop.f32.mrf.mxu1 }
  0xf1   : > { %v4168_v50 = vadd.f32 %v3410_v49, %v3381_v48  ;;  %v471_v51 = vpop.f32.mrf.mxu0 }
  0xf2   : > { %v680_v52 = vpop.f32.mrf.mxu1 }
  0xf3   : > { %v4170_v53 = vadd.f32 %v680_v52, %v471_v51  ;;  %v3384_v54 = vpop.f32.mrf.mxu0 }
  0xf4   : > { %v3413_v55 = vpop.f32.mrf.mxu1 }
  0xf5   : > { %v4172_v56 = vadd.f32 %v3413_v55, %v3384_v54  ;;  %v481_v57 = vpop.f32.mrf.mxu0 }
  0xf6   : > { %v690_v58 = vpop.f32.mrf.mxu1 }
  0xf7   : > { %v4174_v59 = vadd.f32 %v690_v58, %v481_v57  ;;  %v3387_v60 = vpop.f32.mrf.mxu0 }
  0xf8   : > { %v3416_v61 = vpop.f32.mrf.mxu1 }
  0xf9   : > { %v4176_v62 = vadd.f32 %v3416_v61, %v3387_v60  ;;  %v491_v63 = vpop.f32.mrf.mxu0 }
  0xfa   : > { %v700_v0 = vpop.f32.mrf.mxu1 }
  0xfb   : > { %v4178_v1 = vadd.f32 %v700_v0, %v491_v63  ;;  %v3421_v2 = vpop.f32.mrf.mxu0 }
  0xfc   : > { %v3450_v3 = vpop.f32.mrf.mxu1  ;;  %v940_v4 = vadd.f32 %v3421_v2, %v626_v14 }
  0xfd   : > { %v850_v5 = vpop.f32.mrf.mxu0 }
  0xfe   : > { %v1098_v6 = vpop.f32.mrf.mxu1  ;;  %v939_v7 = vadd.f32 %v850_v5, %v621_v17  ;;  %v4180_v8 = vadd.f32 %v3450_v3, %v940_v4 }
  0xff   : > { %v3424_v9 = vpop.f32.mrf.mxu0 }
 0x100   : > { %v3453_v10 = vpop.f32.mrf.mxu1  ;;  %v942_v11 = vadd.f32 %v3424_v9, %v636_v20  ;;  %v4182_v12 = vadd.f32 %v1098_v6, %v939_v7 }
 0x101   : > { %v860_v13 = vpop.f32.mrf.mxu0 }
 0x102   : > { %v1108_v15 = vpop.f32.mrf.mxu1  ;;  %v941_v16 = vadd.f32 %v860_v13, %v631_v23  ;;  %v4184_v18 = vadd.f32 %v3453_v10, %v942_v11 }
 0x103   : > { %v3427_v19 = vpop.f32.mrf.mxu0 }
 0x104   : > { %v3456_v21 = vpop.f32.mrf.mxu1  ;;  %v944_v22 = vadd.f32 %v3427_v19, %v646_v26  ;;  %v4186_v24 = vadd.f32 %v1108_v15, %v941_v16 }
 0x105   : > { %v870_v14 = vpop.f32.mrf.mxu0 }
 0x106   : > { %v1118_v25 = vpop.f32.mrf.mxu1  ;;  %v943_v17 = vadd.f32 %v870_v14, %v641_v29  ;;  %v4188_v27 = vadd.f32 %v3456_v21, %v944_v22 }
 0x107   : > { %v3430_v28 = vpop.f32.mrf.mxu0 }
 0x108   : > { %v3459_v30 = vpop.f32.mrf.mxu1  ;;  %v946_v20 = vadd.f32 %v3430_v28, %v656_v32  ;;  %v4190_v31 = vadd.f32 %v1118_v25, %v943_v17 }
 0x109   : > { %v880_v33 = vpop.f32.mrf.mxu0 }
 0x10a   : > { %v1128_v34 = vpop.f32.mrf.mxu1  ;;  %v945_v23 = vadd.f32 %v880_v33, %v651_v35  ;;  %v1194_v36 = vadd.f32 %v3459_v30, %v946_v20 }
 0x10b   : > { %v3433_v37 = vpop.f32.mrf.mxu0 }
 0x10c   : > { %v3462_v39 = vpop.f32.mrf.mxu1  ;;  %v948_v40 = vadd.f32 %v3433_v37, %v666_v38  ;;  %v1193_v26 = vadd.f32 %v1128_v34, %v945_v23 }
 0x10d   : > { %v890_v42 = vpop.f32.mrf.mxu0 }
 0x10e   : > { %v1138_v43 = vpop.f32.mrf.mxu1  ;;  %v947_v45 = vadd.f32 %v890_v42, %v661_v41  ;;  %v1196_v46 = vadd.f32 %v3462_v39, %v948_v40 }
 0x10f   : > { %v3436_v29 = vpop.f32.mrf.mxu0 }
 0x110   : > { %v3465_v48 = vpop.f32.mrf.mxu1  ;;  %v950_v49 = vadd.f32 %v3436_v29, %v4164_v44  ;;  %v1195_v51 = vadd.f32 %v1138_v43, %v947_v45 }
 0x111   : > { %v900_v32 = vpop.f32.mrf.mxu0 }
 0x112   : > { %v1148_v52 = vpop.f32.mrf.mxu1  ;;  %v949_v54 = vadd.f32 %v900_v32, %v4166_v47  ;;  %v1198_v55 = vadd.f32 %v3465_v48, %v950_v49 }
 0x113   : > { %v3439_v35 = vpop.f32.mrf.mxu0 }
 0x114   : > { %v3468_v57 = vpop.f32.mrf.mxu1  ;;  %v952_v58 = vadd.f32 %v3439_v35, %v4168_v50  ;;  %v1197_v38 = vadd.f32 %v1148_v52, %v949_v54 }
 0x115   : > { %v910_v60 = vpop.f32.mrf.mxu0 }
 0x116   : > { %v1158_v61 = vpop.f32.mrf.mxu1  ;;  %v951_v41 = vadd.f32 %v910_v60, %v4170_v53  ;;  %v1200_v63 = vadd.f32 %v3468_v57, %v952_v58 }
 0x117   : > { %v3442_v0 = vpop.f32.mrf.mxu0 }
 0x118   : > { %v3471_v2 = vpop.f32.mrf.mxu1  ;;  %v954_v44 = vadd.f32 %v3442_v0, %v4172_v56  ;;  %v1199_v3 = vadd.f32 %v1158_v61, %v951_v41 }
 0x119   : > { %v920_v4 = vpop.f32.mrf.mxu0 }
 0x11a   : > { %v1168_v5 = vpop.f32.mrf.mxu1  ;;  %v953_v47 = vadd.f32 %v920_v4, %v4174_v59  ;;  %v1202_v6 = vadd.f32 %v3471_v2, %v954_v44 }
 0x11b   : > { %v3445_v7 = vpop.f32.mrf.mxu0 }
 0x11c   : > { %v3474_v9 = vpop.f32.mrf.mxu1  ;;  %v956_v50 = vadd.f32 %v3445_v7, %v4176_v62  ;;  %v1201_v10 = vadd.f32 %v1168_v5, %v953_v47 }
 0x11d   : > { %v930_v11 = vpop.f32.mrf.mxu0 }
 0x11e   : > { %v1178_v13 = vpop.f32.mrf.mxu1  ;;  %v955_v53 = vadd.f32 %v930_v11, %v4178_v1  ;;  %v1204_v15 = vadd.f32 %v3474_v9, %v956_v50 }
 0x11f   : > { %v3479_v16 = vpop.f32.mrf.mxu0 }
 0x120   : > { %v4200_v19 = vpop.f32.mrf.mxu1  ;;  %v1203_v56 = vadd.f32 %v1178_v13, %v955_v53  ;;  %v4203_v21 = vadd.f32 %v3479_v16, %v4180_v8 }
 0x121   : > { %v1346_v22 = vpop.f32.mrf.mxu0 }
 0x122   : > { %v4205_v59 = vpop.f32.mrf.mxu1  ;;  %v4208_v14 = vadd.f32 %v1346_v22, %v4182_v12 }
 0x123   : > { %v3482_v62 = vpop.f32.mrf.mxu0 }
 0x124   : > { %v4210_v25 = vpop.f32.mrf.mxu1  ;;  %v4213_v17 = vadd.f32 %v3482_v62, %v4184_v18 }
 0x125   : > { %v1356_v1 = vpop.f32.mrf.mxu0 }
 0x126   : > { %v4215_v28 = vpop.f32.mrf.mxu1  ;;  %v4218_v30 = vadd.f32 %v1356_v1, %v4186_v24 }
 0x127   : > { %v3485_v8 = vpop.f32.mrf.mxu0 }
 0x128   : > { %v4220_v20 = vpop.f32.mrf.mxu1  ;;  %v4223_v33 = vadd.f32 %v3485_v8, %v4188_v27 }
 0x129   : > { %v1366_v12 = vpop.f32.mrf.mxu0 }
 0x12a   : > { %v4225_v34 = vpop.f32.mrf.mxu1  ;;  %v4228_v23 = vadd.f32 %v1366_v12, %v4190_v31 }
 0x12b   : > { %v3488_v18 = vpop.f32.mrf.mxu0 }
 0x12c   : > { %v4230_v37 = vpop.f32.mrf.mxu1  ;;  %v4232_v39 = vadd.f32 %v3488_v18, %v1194_v36 }
 0x12d   : > { %v1376_v40 = vpop.f32.mrf.mxu0 }
 0x12e   : > { %v4234_v24 = vpop.f32.mrf.mxu1  ;;  %v4236_v42 = vadd.f32 %v1376_v40, %v1193_v26 }
 0x12f   : > { %v3491_v43 = vpop.f32.mrf.mxu0 }
 0x130   : > { %v4238_v45 = vpop.f32.mrf.mxu1  ;;  %v4240_v27 = vadd.f32 %v3491_v43, %v1196_v46 }
 0x131   : > { %v1386_v29 = vpop.f32.mrf.mxu0 }
 0x132   : > { %v4242_v48 = vpop.f32.mrf.mxu1  ;;  %v4244_v31 = vadd.f32 %v1386_v29, %v1195_v51 }
 0x133   : > { %v3494_v49 = vpop.f32.mrf.mxu0 }
 0x134   : > { %v4246_v32 = vpop.f32.mrf.mxu1  ;;  %v4248_v36 = vadd.f32 %v3494_v49, %v1198_v55 }
 0x135   : > { %v1396_v52 = vpop.f32.mrf.mxu0 }
 0x136   : > { %v4250_v54 = vpop.f32.mrf.mxu1  ;;  %v4252_v26 = vadd.f32 %v1396_v52, %v1197_v38 }
 0x137   : > { %v3497_v35 = vpop.f32.mrf.mxu0 }
 0x138   : > { %v4254_v57 = vpop.f32.mrf.mxu1  ;;  %v4256_v46 = vadd.f32 %v3497_v35, %v1200_v63 }
 0x139   : > { %v1406_v58 = vpop.f32.mrf.mxu0 }
 0x13a   : > { %v4258_v60 = vpop.f32.mrf.mxu1  ;;  %v4260_v51 = vadd.f32 %v1406_v58, %v1199_v3  ;;  %v1684_v58 = vadd.f32 %v4200_v19, %v4203_v21  ;;  %v1685_v19 = vadd.f32 %v4215_v28, %v4218_v30  ;;  %v1687_v28 = vadd.f32 %v4225_v34, %v4228_v23 }
 0x13b   : > { %v3500_v61 = vpop.f32.mrf.mxu0 }
 0x13c   : > { %v4262_v41 = vpop.f32.mrf.mxu1  ;;  %v4264_v55 = vadd.f32 %v3500_v61, %v1202_v6 }
 0x13d   : > { %v1416_v0 = vpop.f32.mrf.mxu0 }
 0x13e   : > { %v4266_v2 = vpop.f32.mrf.mxu1  ;;  %v4268_v38 = vadd.f32 %v1416_v0, %v1201_v10 }
 0x13f   : > { %4464 = vst [vmem:[#allocation2_spill] sm:$0xff] %v4266_v2  ;;  %v3503_v44 = vpop.f32.mrf.mxu0 }
 0x140   : > { %v4270_v4 = vpop.f32.mrf.mxu1  ;;  %v4272_v63 = vadd.f32 %v3503_v44, %v1204_v15  ;;  %v1683_v44 = vadd.f32 %v4205_v59, %v4208_v14  ;;  %v1688_v59 = vadd.f32 %v4220_v20, %v4223_v33  ;;  %v1690_v20 = vadd.f32 %v4230_v37, %v4232_v39 }
 0x141   : > { %4465 = vst [vmem:[#allocation3_spill] sm:$0xff] %v4270_v4  ;;  %v1426_v5 = vpop.f32.mrf.mxu0  ;;  %v1692_v37 = vadd.f32 %v4238_v45, %v4240_v27 }
 0x142   : > { %4466 = vst [vmem:[#allocation4_spill] sm:$0xff] %v4272_v63  ;;  %v4274_v47 = vpop.f32.mrf.mxu1  ;;  %v4276_v3 = vadd.f32 %v1426_v5, %v1203_v56 }
 0x143   : > { %4467 = vst [vmem:[#allocation5_spill] sm:$0xff] %v4274_v47  ;;  %v3537_v7 = vpop.f32.mrf.mxu0 }
 0x144   : > { %4468 = vst [vmem:[#allocation6_spill] sm:$0xff] %v4276_v3  ;;  %v3566_v9 = vpop.f32.mrf.mxu1  ;;  %v1932_v5 = vadd.f32 %v3537_v7, %v1684_v58  ;;  %v1686_v3 = vadd.f32 %v4210_v25, %v4213_v17  ;;  %v4317_v25 = vld [vmem:[%s4460_s2] ss:$0 sm:$0xff] }
 0x145   : > { %v1842_v50 = vpop.f32.mrf.mxu0 }
 0x146   : > { %v2090_v6 = vpop.f32.mrf.mxu1  ;;  %v1931_v4 = vadd.f32 %v1842_v50, %v1683_v44  ;;  %v2180_v21 = vadd.f32 %v3566_v9, %v1932_v5  ;;  %v1689_v44 = vadd.f32 %v4234_v24, %v4236_v42  ;;  %v1691_v24 = vadd.f32 %v4242_v48, %v4244_v31 }
 0x147   : > { %v3540_v11 = vpop.f32.mrf.mxu0 }
 0x148   : > { %v3569_v53 = vpop.f32.mrf.mxu1  ;;  %v1934_v2 = vadd.f32 %v3540_v11, %v1686_v3  ;;  %v2179_v14 = vadd.f32 %v2090_v6, %v1931_v4 }
 0x149   : > { %v1852_v13 = vpop.f32.mrf.mxu0 }
 0x14a   : > { %v2100_v10 = vpop.f32.mrf.mxu1  ;;  %v1933_v7 = vadd.f32 %v1852_v13, %v1685_v19  ;;  %v2182_v30 = vadd.f32 %v3569_v53, %v1934_v2 }
 0x14b   : > { %v3543_v16 = vpop.f32.mrf.mxu0 }
 0x14c   : > { %v3572_v1 = vpop.f32.mrf.mxu1  ;;  %v1936_v3 = vadd.f32 %v3543_v16, %v1688_v59  ;;  %v2181_v6 = vadd.f32 %v2100_v10, %v1933_v7 }
 0x14d   : > { %v1862_v22 = vpop.f32.mrf.mxu0 }
 0x14e   : > { %v2110_v12 = vpop.f32.mrf.mxu1  ;;  %v1935_v11 = vadd.f32 %v1862_v22, %v1687_v28  ;;  %v2184_v34 = vadd.f32 %v3572_v1, %v1936_v3 }
 0x14f   : > { %v3546_v62 = vpop.f32.mrf.mxu0 }
 0x150   : > { %v3575_v40 = vpop.f32.mrf.mxu1  ;;  %v1938_v23 = vadd.f32 %v3546_v62, %v1690_v20  ;;  %v2183_v22 = vadd.f32 %v2110_v12, %v1935_v11 }
 0x151   : > { %v1872_v8 = vpop.f32.mrf.mxu0 }
 0x152   : > { %v4288_v49 = vpop.f32.mrf.mxu1  ;;  %v2186_v1 = vadd.f32 %v3575_v40, %v1938_v23 }
 0x153   : > { %v4278_v15 = vpop.f32.mrf.mxu0 }
 0x154   : > { %v4296_v61 = vpop.f32.mrf.mxu1  ;;  %v1940_v45 = vadd.f32 %v4278_v15, %v1692_v37  ;;  %v1693_v15 = vadd.f32 %v4250_v54, %v4252_v26 }
 0x155   : > { %v4280_v18 = vpop.f32.mrf.mxu0 }
 0x156   : > { %v4306_v63 = vpop.f32.mrf.mxu1  ;;  %v1939_v48 = vadd.f32 %v4280_v18, %v1691_v24  ;;  %v1696_v18 = vadd.f32 %v4254_v57, %v4256_v46 }
 0x157   : > { %v4282_v56 = vpop.f32.mrf.mxu0 }
 0x158   : > { %v4319_v17 = vpop.f32.mrf.mxu1 }
 0x159   : > { %v4284_v43 = vpop.f32.mrf.mxu0 }
 0x15a   : > { %v2140_v5 = vpop.f32.mrf.mxu1  ;;  %v1941_v54 = vadd.f32 %v4284_v43, %v1693_v15  ;;  %v1698_v43 = vadd.f32 %v4262_v41, %v4264_v55 }
 0x15b   : > { %v4286_v29 = vpop.f32.mrf.mxu0 }
 0x15c   : > { %v3584_v42 = vpop.f32.mrf.mxu1  ;;  %v1944_v46 = vadd.f32 %v4286_v29, %v1696_v18  ;;  %v2189_v23 = vadd.f32 %v2140_v5, %v1941_v54  ;;  %v4473_v5 = vld [vmem:[#allocation4_spill] sm:$0xff] }
 0x15d   : > { %v4290_v52 = vpop.f32.mrf.mxu0 }
 0x15e   : > { %v2150_v40 = vpop.f32.mrf.mxu1  ;;  %v2192_v41 = vadd.f32 %v3584_v42, %v1944_v46  ;;  %v4476_v42 = vld [vmem:[#allocation6_spill] sm:$0xff] }
 0x15f   : > { %v4292_v35 = vpop.f32.mrf.mxu0 }
 0x160   : > { %4469 = vst [vmem:[#allocation7_spill] sm:$0xff] %v4292_v35 }
 0x161   : > { %v4298_v0 = vpop.f32.mrf.mxu0 }
 0x162   : > { %4470 = vst [vmem:[#allocation8_spill] sm:$0xff] %v4298_v0 }
 0x163   : > { %v4302_v47 = vpop.f32.mrf.mxu0 }
 0x165   : > { %v4308_v35 = vpop.f32.mrf.mxu0 }
 0x167   : > { %v3595_v0 = vpop.f32.mrf.mxu0  ;;  %v4472_v55 = vld [vmem:[#allocation7_spill] sm:$0xff] }
 0x168   : > { %v2428_v58 = vadd.f32 %v3595_v0, %v2180_v21  ;;  %v1937_v21 = vadd.f32 %v1872_v8, %v1689_v44  ;;  %v1694_v8 = vadd.f32 %v4246_v32, %v4248_v36  ;;  %v2188_v32 = vadd.f32 %v4296_v61, %v1940_v45  ;;  %v3587_v61 = vpop.f32.mrf.mxu1 }
 0x169   : > { %v2338_v50 = vpop.f32.mrf.mxu0 }
 0x16a   : > { %v2427_v9 = vadd.f32 %v2338_v50, %v2179_v14  ;;  %v2453_v33 = vadd.f32 %v4317_v25, %v2428_v58  ;;  %v2185_v28 = vadd.f32 %v4288_v49, %v1937_v21  ;;  %v1942_v36 = vadd.f32 %v4282_v56, %v1694_v8 }
 0x16b   : > { %v3598_v4 = vpop.f32.mrf.mxu0  ;;  %v1695_v56 = vadd.f32 %v4258_v60, %v4260_v51 }
 0x16c   : > { %v2452_v13 = vadd.f32 %v4317_v25, %v2427_v9  ;;  %v2430_v0 = vadd.f32 %v3598_v4, %v2182_v30  ;;  %v2471_v39 = vmax.f32 %v2453_v33, 0.0  ;;  %v2190_v57 = vadd.f32 %v4319_v17, %v1942_v36  ;;  %v4471_v17 = vld [vmem:[#allocation2_spill] sm:$0xff] }
 0x16d   : > { %v2348_v19 = vpop.f32.mrf.mxu0  ;;  %v1943_v60 = vadd.f32 %v4290_v52, %v1695_v56  ;;  %v1697_v29 = vadd.f32 %v4471_v17, %v4268_v38 }
 0x16e   : > { %v2470_v2 = vmax.f32 %v2452_v13, 0.0  ;;  %v2429_v53 = vadd.f32 %v2348_v19, %v2181_v6  ;;  %v2455_v16 = vadd.f32 %v4317_v25, %v2430_v0  ;;  %v2187_v6 = vadd.f32 %v4306_v63, %v1939_v48 }
 0x16f   : > { %v3601_v10 = vpop.f32.mrf.mxu0  ;;  %v2191_v24 = vadd.f32 %v2150_v40, %v1943_v60 }
 0x170   : > { %v2454_v59 = vadd.f32 %v4317_v25, %v2429_v53  ;;  %v2432_v14 = vadd.f32 %v3601_v10, %v2184_v34  ;;  %3622 = vmatprep.mubr.msk.f32.mxu1 %vm290_vm0, %v2470_v2  ;;  %v2473_v12 = vmax.f32 %v2455_v16, 0.0  ;;  %v2160_v53 = vpop.f32.mrf.mxu1 }
 0x171   : > { %v2358_v62 = vpop.f32.mrf.mxu0  ;;  %3623 = vmatmul.mubr.msk.f32.vlgmr.msra.gmra.mxu1 %vm290_vm0, %v2471_v39  ;;  %v1946_v39 = vadd.f32 %v4472_v55, %v1698_v43 }
 0x172   : > { %v2472_v27 = vmax.f32 %v2454_v59, 0.0  ;;  %v2431_v7 = vadd.f32 %v2358_v62, %v2183_v22  ;;  %v2457_v58 = vadd.f32 %v4317_v25, %v2432_v14  ;;  %v4474_v22 = vld [vmem:[#allocation3_spill] sm:$0xff]  ;;  %v4475_v62 = vld [vmem:[#allocation8_spill] sm:$0xff]  ;;  %v3590_v8 = vpop.f32.mrf.mxu1 }
 0x173   : > { %v3604_v50 = vpop.f32.mrf.mxu0  ;;  %v1700_v52 = vadd.f32 %v4474_v22, %v4473_v5 }
 0x174   : > { %v2456_v31 = vadd.f32 %v4317_v25, %v2431_v7  ;;  %v2434_v30 = vadd.f32 %v3604_v50, %v2186_v1  ;;  %3625 = vmatprep.mubr.msk.f32.mxu1 %vm290_vm0, %v2472_v27  ;;  %v2475_v20 = vmax.f32 %v2457_v58, 0.0  ;;  %v1945_v1 = vadd.f32 %v4475_v62, %v1697_v29  ;;  %v4477_v27 = vld [vmem:[#allocation5_spill] sm:$0xff] }
 0x175   : > { %v2368_v3 = vpop.f32.mrf.mxu0  ;;  %3626 = vmatmul.mubr.msk.f32.gmra.mxu1 %vm290_vm0, %v2473_v12  ;;  %v1699_v7 = vadd.f32 %v4477_v27, %v4476_v42  ;;  %v2194_v58 = vadd.f32 %v3587_v61, %v1946_v39  ;;  %v1948_v50 = vadd.f32 %v4302_v47, %v1700_v52 }
 0x176   : > { %v2474_v9 = vmax.f32 %v2456_v31, 0.0  ;;  %v2433_v49 = vadd.f32 %v2368_v3, %v2185_v28  ;;  %v2459_v33 = vadd.f32 %v4317_v25, %v2434_v30  ;;  %v2193_v40 = vadd.f32 %v2160_v53, %v1945_v1 }
 0x177   : > { %v3607_v4 = vpop.f32.mrf.mxu0  ;;  %v1947_v3 = vadd.f32 %v4308_v35, %v1699_v7  ;;  %v2196_v18 = vadd.f32 %v3590_v8, %v1948_v50 }
 0x178   : > { %v2458_v26 = vadd.f32 %v4317_v25, %v2433_v49  ;;  %v2436_v11 = vadd.f32 %v3607_v4, %v2188_v32  ;;  %3628 = vmatprep.mubr.msk.f32.mxu1 %vm290_vm0, %v2474_v9  ;;  %v2477_v44 = vmax.f32 %v2459_v33, 0.0  ;;  %v2170_v9 = vpop.f32.mrf.mxu1 }
 0x179   : > { %v2378_v13 = vpop.f32.mrf.mxu0  ;;  %3629 = vmatmul.mubr.msk.f32.gmra.mxu1 %vm290_vm0, %v2475_v20  ;;  %v2195_v54 = vadd.f32 %v2170_v9, %v1947_v3 }
 0x17a   : > { %v2476_v0 = vmax.f32 %v2458_v26, 0.0  ;;  %v2435_v63 = vadd.f32 %v2378_v13, %v2187_v6  ;;  %v2461_v19 = vadd.f32 %v4317_v25, %v2436_v11 }
 0x17b   : > { %v3610_v34 = vpop.f32.mrf.mxu0 }
 0x17c   : > { %v2460_v51 = vadd.f32 %v4317_v25, %v2435_v63  ;;  %v2438_v2 = vadd.f32 %v3610_v34, %v2190_v57  ;;  %3631 = vmatprep.mubr.msk.f32.mxu1 %vm290_vm0, %v2476_v0  ;;  %v2479_v21 = vmax.f32 %v2461_v19, 0.0 }
 0x17d   : > { %v2388_v37 = vpop.f32.mrf.mxu0  ;;  %3632 = vmatmul.mubr.msk.f32.gmra.mxu1 %vm290_vm0, %v2477_v44 }
 0x17e   : > { %v2478_v16 = vmax.f32 %v2460_v51, 0.0  ;;  %v2437_v10 = vadd.f32 %v2388_v37, %v2189_v23  ;;  %v2463_v59 = vadd.f32 %v4317_v25, %v2438_v2 }
 0x17f   : > { %v3613_v14 = vpop.f32.mrf.mxu0 }
 0x180   : > { %v2462_v38 = vadd.f32 %v4317_v25, %v2437_v10  ;;  %v2440_v45 = vadd.f32 %v3613_v14, %v2192_v41  ;;  %3634 = vmatprep.mubr.msk.f32.mxu1 %vm290_vm0, %v2478_v16  ;;  %v2481_v31 = vmax.f32 %v2463_v59, 0.0 }
 0x181   : > { %v2398_v12 = vpop.f32.mrf.mxu0  ;;  %3635 = vmatmul.mubr.msk.f32.gmra.mxu1 %vm290_vm0, %v2479_v21 }
 0x182   : > { %v2480_v28 = vmax.f32 %v2462_v38, 0.0  ;;  %v2439_v48 = vadd.f32 %v2398_v12, %v2191_v24  ;;  %v2465_v30 = vadd.f32 %v4317_v25, %v2440_v45 }
 0x183   : > { %v3616_v15 = vpop.f32.mrf.mxu0 }
 0x184   : > { %v2464_v32 = vadd.f32 %v4317_v25, %v2439_v48  ;;  %v2442_v36 = vadd.f32 %v3616_v15, %v2194_v58  ;;  %3637 = vmatprep.mubr.msk.f32.mxu1 %vm290_vm0, %v2480_v28  ;;  %v2483_v33 = vmax.f32 %v2465_v30, 0.0 }
 0x185   : > { %v2408_v49 = vpop.f32.mrf.mxu0  ;;  %3638 = vmatmul.mubr.msk.f32.gmra.mxu1 %vm290_vm0, %v2481_v31 }
 0x186   : > { %v2482_v47 = vmax.f32 %v2464_v32, 0.0  ;;  %v2441_v20 = vadd.f32 %v2408_v49, %v2193_v40  ;;  %v2467_v4 = vadd.f32 %v4317_v25, %v2442_v36 }
 0x187   : > { %v3619_v6 = vpop.f32.mrf.mxu0 }
 0x188   : > { %v2466_v26 = vadd.f32 %v4317_v25, %v2441_v20  ;;  %v2444_v35 = vadd.f32 %v3619_v6, %v2196_v18  ;;  %3640 = vmatprep.mubr.msk.f32.mxu1 %vm290_vm0, %v2482_v47  ;;  %v2485_v13 = vmax.f32 %v2467_v4, 0.0 }
 0x189   : > { %v2418_v11 = vpop.f32.mrf.mxu0  ;;  %3641 = vmatmul.mubr.msk.f32.gmra.mxu1 %vm290_vm0, %v2483_v33 }
 0x18a   : > { %v2484_v56 = vmax.f32 %v2466_v26, 0.0  ;;  %v2443_v61 = vadd.f32 %v2418_v11, %v2195_v54  ;;  %v2469_v57 = vadd.f32 %v4317_v25, %v2444_v35 }
 0x18c   : > { %v2468_v46 = vadd.f32 %v4317_v25, %v2443_v61  ;;  %3643 = vmatprep.mubr.msk.f32.mxu1 %vm290_vm0, %v2484_v56  ;;  %v2487_v63 = vmax.f32 %v2469_v57, 0.0  ;;  %v3148_v25 = vld [vmem:[%s4462_s4] ss:$0 sm:$0xff] }
 0x18d   : > { %3644 = vmatmul.mubr.msk.f32.gmra.mxu1 %vm290_vm0, %v2485_v13 }
 0x18e   : > { %v2486_v0 = vmax.f32 %v2468_v46, 0.0 }
 0x190   : > { %3646 = vmatprep.mubr.msk.f32.mxu1 %vm290_vm0, %v2486_v0 }
 0x191   : > { %3647 = vmatmul.mubr.msk.f32.gmra.mxu1 %vm290_vm0, %v2487_v63 }
 0x231   : > { %v3624_v43 = vpop.f32.mrf.mxu1 }
 0x232   : > { %v2622_v44 = vadd.f32 %v3624_v43, %v3148_v25 }
 0x233   : > { %v2616_v19 = vpop.f32.mrf.mxu1 }
 0x234   : > { %2707 = vst.msk [vmem:[%s4405_s25 + $0x8] sm:$0xff] %vm2705_vm1, %v2622_v44  ;;  %v2617_v34 = vadd.f32 %v3148_v25, %v2616_v19 }
 0x235   : > { %v3627_v23 = vpop.f32.mrf.mxu1 }
 0x236   : > { %2706 = vst.msk [vmem:[%s4405_s25] sm:$0xff] %vm2705_vm1, %v2617_v34  ;;  %v2632_v60 = vadd.f32 %v3627_v23, %v3148_v25 }
 0x237   : > { %v2626_v51 = vpop.f32.mrf.mxu1 }
 0x238   : > { %2709 = vst.msk [vmem:[%s4405_s25 + $0x18] sm:$0xff] %vm2705_vm1, %v2632_v60  ;;  %v2627_v2 = vadd.f32 %v3148_v25, %v2626_v51 }
 0x239   : > { %v3630_v17 = vpop.f32.mrf.mxu1 }
 0x23a   : > { %2708 = vst.msk [vmem:[%s4405_s25 + $0x10] sm:$0xff] %vm2705_vm1, %v2627_v2  ;;  %v2642_v29 = vadd.f32 %v3630_v17, %v3148_v25 }
 0x23b   : > { %v2636_v53 = vpop.f32.mrf.mxu1 }
 0x23c   : > { %2711 = vst.msk [vmem:[%s4405_s25 + $0x28] sm:$0xff] %vm2705_vm1, %v2642_v29  ;;  %v2637_v37 = vadd.f32 %v3148_v25, %v2636_v53 }
 0x23d   : > { %v3633_v41 = vpop.f32.mrf.mxu1 }
 0x23e   : > { %2710 = vst.msk [vmem:[%s4405_s25 + $0x20] sm:$0xff] %vm2705_vm1, %v2637_v37  ;;  %v2652_v55 = vadd.f32 %v3633_v41, %v3148_v25 }
 0x23f   : > { %v2646_v39 = vpop.f32.mrf.mxu1 }
 0x240   : > { %2713 = vst.msk [vmem:[%s4405_s25 + $0x38] sm:$0xff] %vm2705_vm1, %v2652_v55  ;;  %v2647_v16 = vadd.f32 %v3148_v25, %v2646_v39 }
 0x241   : > { %v3636_v10 = vpop.f32.mrf.mxu1 }
 0x242   : > { %2712 = vst.msk [vmem:[%s4405_s25 + $0x30] sm:$0xff] %vm2705_vm1, %v2647_v16  ;;  %v2662_v5 = vadd.f32 %v3636_v10, %v3148_v25 }
 0x243   : > { %v2656_v22 = vpop.f32.mrf.mxu1 }
 0x244   : > { %2715 = vst.msk [vmem:[%s4405_s25 + $0x48] sm:$0xff] %vm2705_vm1, %v2662_v5  ;;  %v2657_v52 = vadd.f32 %v3148_v25, %v2656_v22 }
 0x245   : > { %v3639_v21 = vpop.f32.mrf.mxu1 }
 0x246   : > { %2714 = vst.msk [vmem:[%s4405_s25 + $0x40] sm:$0xff] %vm2705_vm1, %v2657_v52  ;;  %v2672_v59 = vadd.f32 %v3639_v21, %v3148_v25 }
 0x247   : > { %v2666_v14 = vpop.f32.mrf.mxu1 }
 0x248   : > { %2717 = vst.msk [vmem:[%s4405_s25 + $0x58] sm:$0xff] %vm2705_vm1, %v2672_v59  ;;  %v2667_v24 = vadd.f32 %v3148_v25, %v2666_v14 }
 0x249   : > { %v3642_v62 = vpop.f32.mrf.mxu1 }
 0x24a   : > { %2716 = vst.msk [vmem:[%s4405_s25 + $0x50] sm:$0xff] %vm2705_vm1, %v2667_v24  ;;  %v2682_v1 = vadd.f32 %v3642_v62, %v3148_v25 }
 0x24b   : > { %v2676_v38 = vpop.f32.mrf.mxu1 }
 0x24c   : > { %2719 = vst.msk [vmem:[%s4405_s25 + $0x68] sm:$0xff] %vm2705_vm1, %v2682_v1  ;;  %v2677_v45 = vadd.f32 %v3148_v25, %v2676_v38 }
 0x24d   : > { %v3645_v42 = vpop.f32.mrf.mxu1 }
 0x24e   : > { %2718 = vst.msk [vmem:[%s4405_s25 + $0x60] sm:$0xff] %vm2705_vm1, %v2677_v45  ;;  %v2692_v27 = vadd.f32 %v3645_v42, %v3148_v25 }
 0x24f   : > { %v2686_v7 = vpop.f32.mrf.mxu1 }
 0x250   : > { %2721 = vst.msk [vmem:[%s4405_s25 + $0x78] sm:$0xff] %vm2705_vm1, %v2692_v27  ;;  %v2687_v8 = vadd.f32 %v3148_v25, %v2686_v7 }
 0x251   : > { %v3648_v12 = vpop.f32.mrf.mxu1 }
 0x252   : > { %2720 = vst.msk [vmem:[%s4405_s25 + $0x70] sm:$0xff] %vm2705_vm1, %v2687_v8  ;;  %v2702_v58 = vadd.f32 %v3648_v12, %v3148_v25 }
 0x253   : > { %v2696_v50 = vpop.f32.mrf.mxu1 }
 0x254   : > { %2723 = vst.msk [vmem:[%s4405_s25 + $0x88] sm:$0xff] %vm2705_vm1, %v2702_v58  ;;  %v2697_v28 = vadd.f32 %v3148_v25, %v2696_v50 }
 0x256   : > { %2722 = vst.msk [vmem:[%s4405_s25 + $0x80] sm:$0xff] %vm2705_vm1, %v2697_v28 }
 0x257 PF: > { %s15_s22 = sadd.s32 1, %s3729_s22   ;;  %s4478_s18 = smov %s3721_s20 }
 0x258   : > { %p12_p7 = scmp.ge.s32.totalorder %s15_s22, 6   ;;  %s4479_s19 = smov %s3725_s21 }
 0x259   : > { %s4480_s20 = smov %s4483_s23  ;;  %s4481_s21 = smov %s4487_s24 }
 0x25a   :  { %14 = sbr.rel (!%p12_p7) target bundleno = 3 (0x3), region = 79 }

</bundles_post_ra>
